<compile_context>
chip_gen: v7x
topology: tpu7x:2x2x1
jax: 0.10.0
libtpu: 0.0.40
codegen_flags: <defaults>
</compile_context>

<pallas_src>
import math

import jax
import jax.numpy as jnp
from jax.experimental import pallas as pl
from jax.experimental.pallas import tpu as pltpu

_LANE = 128
_BF16_SUBLANE = 16  # bf16 packs 2 rows per sublane -> 16-row row granularity


def _round_up(n, m):
    return ((int(n) + m - 1) // m) * m


def _is_pre_v6_tpu():
    """v5e and older: no bf16 VPU/EUP and a ~5x slower MXU, so the exact erf GELU
    hides under the matmul; keep it there for torch.nn.GELU() fidelity."""
    try:
        kind = jax.devices()[0].device_kind.lower()
    except Exception:
        return False
    return any(("v%d" % v) in kind for v in (2, 3, 4, 5))


def _make_mlp_kernel(exact_gelu):
    inv_sqrt2 = 1.0 / math.sqrt(2.0)

    def kernel(x_ref, w1_ref, b1_ref, w2_ref, b2_ref, o_ref):
        # x arrives f32 straight from HBM; this in-kernel bf16 cast is cheap VPU work
        # hidden under the MXU/DMA (no extra host-side HBM read+write pass).
        x = x_ref[...].astype(jnp.bfloat16)
        # fc1 on the MXU, f32 accumulation.
        h = jnp.dot(x, w1_ref[...], preferred_element_type=jnp.float32)
        h = h + b1_ref[...]
        if exact_gelu:
            # v5e & older: exact erf GELU (matches torch.nn.GELU() default).
            h = 0.5 * h * (1.0 + jax.lax.erf(h * inv_sqrt2))
        else:
            # v6e/v7x: tanh-approx GELU -> transcendental rides the EUP slot instead of
            # saturating the VALU with a long f32 erf polynomial.
            h = jax.nn.gelu(h, approximate=True)
        # dropout(p=0.15) is identity in eval/inference mode.
        # TODO(synk): training-mode dropout would need pltpu.prng_seed / prng_random_bits.
        # fc2 on the MXU (bf16 hidden is intentional; gives ~bf16-level logit tolerance).
        out = jnp.dot(h.astype(jnp.bfloat16), w2_ref[...],
                      preferred_element_type=jnp.float32)
        out = out + b2_ref[...]
        o_ref[...] = out.astype(o_ref.dtype)

    return kernel


def prepare_params(w1, b1, w2, b2):
    """One-time weight prep: bf16 cast of W1/W2, lane-pad W2/b2 to a multiple of 128.
    Call once and reuse across forward calls (hoisted out of the hot path)."""
    d_in, d_hid = w1.shape
    assert w2.shape[0] == d_hid
    d_out = int(w2.shape[1])
    d_out_pad = _round_up(d_out, _LANE)
    w1_b = jnp.asarray(w1, jnp.bfloat16)
    b1_r = jnp.asarray(b1, jnp.float32).reshape(1, d_hid)
    w2_b = jnp.pad(jnp.asarray(w2, jnp.bfloat16), ((0, 0), (0, d_out_pad - d_out)))
    b2_r = jnp.pad(jnp.asarray(b2, jnp.float32).reshape(1, d_out),
                   ((0, 0), (0, d_out_pad - d_out)))
    return {"w1": w1_b, "b1": b1_r, "w2": w2_b, "b2": b2_r, "d_out": d_out}


def llm_classifier_forward(x, params, *, batch_tile=512):
    """LLMClassifier forward (eval mode).
    x: [B, 1280] float32, params: output of prepare_params().
    Returns (logits [B, d_out] float32, 0) — same as the PyTorch module."""
    B, d_in = x.shape
    w1_b, b1_r, w2_b, b2_r = params["w1"], params["b1"], params["w2"], params["b2"]
    d_hid = w1_b.shape[1]
    d_out_pad = w2_b.shape[1]
    d_out = params["d_out"]
    assert w1_b.shape[0] == d_in

    # Batch tile: multiples of 16 rows (bf16 sublane pack); snap large tiles to 256
    # (MXU-filling on v6e/v7x). No tile-halving heuristic: on single-TC chips the grid
    # is a serial loop; on v7x, B > batch_tile naturally yields a multi-step parallel grid.
    bt = min(int(batch_tile), _round_up(B, _BF16_SUBLANE))
    bt = _round_up(bt, 256 if bt >= 256 else _BF16_SUBLANE)

    # No host-side pad of x: Pallas masks the partial last tile; padded rows only
    # produce garbage output rows, which the [:B] slice below discards.
    grid = (pl.cdiv(B, bt),)

    x = jnp.asarray(x, jnp.float32)
    out = pl.pallas_call(
        _make_mlp_kernel(exact_gelu=_is_pre_v6_tpu()),
        out_shape=jax.ShapeDtypeStruct((B, d_out_pad), jnp.bfloat16),
        grid_spec=pltpu.PrefetchScalarGridSpec(
            num_scalar_prefetch=0,
            grid=grid,
            in_specs=[
                pl.BlockSpec((bt, d_in), lambda i: (i, 0)),          # x tile (f32, streamed)
                pl.BlockSpec((d_in, d_hid), lambda i: (0, 0)),       # W1 (bf16, resident)
                pl.BlockSpec((1, d_hid), lambda i: (0, 0)),          # b1 (f32)
                pl.BlockSpec((d_hid, d_out_pad), lambda i: (0, 0)),  # W2 (bf16, lane-padded)
                pl.BlockSpec((1, d_out_pad), lambda i: (0, 0)),      # b2 (f32, lane-padded)
            ],
            out_specs=pl.BlockSpec((bt, d_out_pad), lambda i: (i, 0)),
        ),
        compiler_params=pltpu.CompilerParams(
            dimension_semantics=("parallel",),
            vmem_limit_bytes=32 * 1024 * 1024,
        ),
    )(x, w1_b, b1_r, w2_b, b2_r)

    # Slice off lane padding + any masked batch rows; return f32 logits like the module.
    return out[:B, :d_out].astype(jnp.float32), 0


def init_params(key, d_in=1280, d_hid=512, d_out=8):
    """Deterministic init mirroring nn.Linear's U(-1/sqrt(fan_in), 1/sqrt(fan_in))."""
    k1, k2, k3, k4 = jax.random.split(key, 4)
    lim1 = 1.0 / math.sqrt(d_in)
    lim2 = 1.0 / math.sqrt(d_hid)
    w1 = jax.random.uniform(k1, (d_in, d_hid), jnp.float32, -lim1, lim1)
    b1 = jax.random.uniform(k2, (1, d_hid), jnp.float32, -lim1, lim1)
    w2 = jax.random.uniform(k3, (d_hid, d_out), jnp.float32, -lim2, lim2)
    b2 = jax.random.uniform(k4, (1, d_out), jnp.float32, -lim2, lim2)
    return w1, b1, w2, b2


def _reference(x, w1, b1, w2, b2):
    h = x @ w1 + b1.reshape(1, -1)
    h = 0.5 * h * (1.0 + jax.lax.erf(h / math.sqrt(2.0)))
    return h @ w2 + b2.reshape(1, -1)


if __name__ == "__main__":
    key = jax.random.PRNGKey(0)
    kx1, kx2, kp = jax.random.split(key, 3)

    D_IN, D_HID, D_OUT = 1280, 512, 8
    w1, b1, w2, b2 = init_params(kp, D_IN, D_HID, D_OUT)
    params = prepare_params(w1, b1, w2, b2)  # one-time weight prep (hoisted)

    # case 1: small batch — single-tile path, block larger than the array (masked)
    x1 = jax.random.normal(kx1, (8, D_IN), jnp.float32)
    y1, aux1 = llm_classifier_forward(x1, params)
    y1 = jax.block_until_ready(y1)
    ref1 = _reference(x1, w1, b1, w2, b2)
    assert y1.shape == (8, D_OUT)
    assert aux1 == 0
    # bf16 MXU matmuls (f32 acc) + tanh-GELU on v6e/v7x + bf16 writeback -> loose tolerance
    assert jnp.allclose(y1, ref1, atol=3e-2, rtol=3e-2), "mismatch vs reference (case 1)"

    # case 2: ragged batch — exercises the Pallas partial-tile masking path
    x2 = jax.random.normal(kx2, (12, D_IN), jnp.float32)
    y2, _ = llm_classifier_forward(x2, params)
    y2 = jax.block_until_ready(y2)
    ref2 = _reference(x2, w1, b1, w2, b2)
    assert y2.shape == (12, D_OUT)
    assert jnp.allclose(y2, ref2, atol=3e-2, rtol=3e-2), "mismatch vs reference (case 2)"

    print("KERNEL_OK")
</pallas_src>

<mosaic_0001>
module attributes {stable_mosaic.version = 11 : i64} {
  func.func @kernel(%arg0: i32, %arg1: memref<16x1280xf32, #tpu.memory_space<vmem>>, %arg2: memref<1280x512xbf16, #tpu.memory_space<vmem>>, %arg3: memref<1x512xf32, #tpu.memory_space<vmem>>, %arg4: memref<512x128xbf16, #tpu.memory_space<vmem>>, %arg5: memref<1x128xf32, #tpu.memory_space<vmem>>, %arg6: memref<16x128xbf16, #tpu.memory_space<vmem>>) attributes {dimension_semantics = [#tpu.dimension_semantics<parallel>], iteration_bounds = array<i64: 1>, scalar_prefetch = 0 : i64, scratch_operands = 0 : i64, tpu.core_type = #tpu.core_type<tc>, window_params = [{transform_indices = @transform_0, window_bounds = array<i64: 16, 1280>}, {pipeline_mode = #tpu.pipeline_mode<synchronous>, transform_indices = @transform_1, window_bounds = array<i64: 1280, 512>}, {pipeline_mode = #tpu.pipeline_mode<synchronous>, transform_indices = @transform_2, window_bounds = array<i64: 1, 512>}, {pipeline_mode = #tpu.pipeline_mode<synchronous>, transform_indices = @transform_3, window_bounds = array<i64: 512, 128>}, {pipeline_mode = #tpu.pipeline_mode<synchronous>, transform_indices = @transform_4, window_bounds = array<i64: 1, 128>}, {transform_indices = @transform_5, window_bounds = array<i64: 16, 128>}]} {
    %c0 = arith.constant 0 : index
    %c0_0 = arith.constant 0 : index
    %0 = vector.load %arg1[%c0, %c0_0] : memref<16x1280xf32, #tpu.memory_space<vmem>>, vector<16x1280xf32>
    %1 = arith.truncf %0 : vector<16x1280xf32> to vector<16x1280xbf16>
    %c0_1 = arith.constant 0 : index
    %c0_2 = arith.constant 0 : index
    %2 = vector.load %arg2[%c0_1, %c0_2] : memref<1280x512xbf16, #tpu.memory_space<vmem>>, vector<1280x512xbf16>
    %cst = arith.constant dense<0.000000e+00> : vector<16x512xf32>
    %3 = tpu.matmul %1, %2, %cst {dimension_numbers = #tpu.dot_dimension_numbers<[1], [0], [0], [1], [0, 0, 1, 1], [], []>} : vector<16x1280xbf16>, vector<1280x512xbf16>, vector<16x512xf32> -> vector<16x512xf32>
    %c0_3 = arith.constant 0 : index
    %c0_4 = arith.constant 0 : index
    %4 = vector.load %arg3[%c0_3, %c0_4] : memref<1x512xf32, #tpu.memory_space<vmem>>, vector<1x512xf32>
    %5 = vector.broadcast %4 : vector<1x512xf32> to vector<16x512xf32>
    %6 = arith.addf %3, %5 : vector<16x512xf32>
    %7 = arith.mulf %6, %6 : vector<16x512xf32>
    %8 = arith.mulf %6, %7 : vector<16x512xf32>
    %cst_5 = arith.constant 4.471500e-02 : f32
    %9 = vector.broadcast %cst_5 : f32 to vector<16x512xf32>
    %10 = arith.mulf %9, %8 : vector<16x512xf32>
    %11 = arith.addf %6, %10 : vector<16x512xf32>
    %cst_6 = arith.constant 0.797884583 : f32
    %12 = vector.broadcast %cst_6 : f32 to vector<16x512xf32>
    %13 = arith.mulf %12, %11 : vector<16x512xf32>
    %14 = math.tanh %13 : vector<16x512xf32>
    %cst_7 = arith.constant 1.000000e+00 : f32
    %15 = vector.broadcast %cst_7 : f32 to vector<16x512xf32>
    %16 = arith.addf %15, %14 : vector<16x512xf32>
    %cst_8 = arith.constant 5.000000e-01 : f32
    %17 = vector.broadcast %cst_8 : f32 to vector<16x512xf32>
    %18 = arith.mulf %17, %16 : vector<16x512xf32>
    %19 = arith.mulf %6, %18 : vector<16x512xf32>
    %20 = arith.truncf %19 : vector<16x512xf32> to vector<16x512xbf16>
    %c0_9 = arith.constant 0 : index
    %c0_10 = arith.constant 0 : index
    %21 = vector.load %arg4[%c0_9, %c0_10] : memref<512x128xbf16, #tpu.memory_space<vmem>>, vector<512x128xbf16>
    %cst_11 = arith.constant dense<0.000000e+00> : vector<16x128xf32>
    %22 = tpu.matmul %20, %21, %cst_11 {dimension_numbers = #tpu.dot_dimension_numbers<[1], [0], [0], [1], [0, 0, 1, 1], [], []>} : vector<16x512xbf16>, vector<512x128xbf16>, vector<16x128xf32> -> vector<16x128xf32>
    %c0_12 = arith.constant 0 : index
    %c0_13 = arith.constant 0 : index
    %23 = vector.load %arg5[%c0_12, %c0_13] : memref<1x128xf32, #tpu.memory_space<vmem>>, vector<1x128xf32>
    %24 = vector.broadcast %23 : vector<1x128xf32> to vector<16x128xf32>
    %25 = arith.addf %22, %24 : vector<16x128xf32>
    %26 = arith.truncf %25 : vector<16x128xf32> to vector<16x128xbf16>
    %c0_14 = arith.constant 0 : index
    %c0_15 = arith.constant 0 : index
    %27 = vector.load %arg6[%c0_14, %c0_15] : memref<16x128xbf16, #tpu.memory_space<vmem>>, vector<16x128xbf16>
    tpu.vector_store %arg6[%c0_14, %c0_15], %26 {strides = array<i32>} : memref<16x128xbf16, #tpu.memory_space<vmem>>, vector<16x128xbf16>,
    return
  }
  func.func @transform_0(%arg0: i32) -> (i32, i32) {
    %c0_i32 = arith.constant 0 : i32
    %c0_i32_0 = arith.constant 0 : i32
    return %arg0, %c0_i32 : i32, i32
  }
  func.func @transform_1(%arg0: i32) -> (i32, i32) {
    %c0_i32 = arith.constant 0 : i32
    %c0_i32_0 = arith.constant 0 : i32
    %c0_i32_1 = arith.constant 0 : i32
    return %c0_i32, %c0_i32_0 : i32, i32
  }
  func.func @transform_2(%arg0: i32) -> (i32, i32) {
    %c0_i32 = arith.constant 0 : i32
    %c0_i32_0 = arith.constant 0 : i32
    %c0_i32_1 = arith.constant 0 : i32
    return %c0_i32, %c0_i32_0 : i32, i32
  }
  func.func @transform_3(%arg0: i32) -> (i32, i32) {
    %c0_i32 = arith.constant 0 : i32
    %c0_i32_0 = arith.constant 0 : i32
    %c0_i32_1 = arith.constant 0 : i32
    return %c0_i32, %c0_i32_0 : i32, i32
  }
  func.func @transform_4(%arg0: i32) -> (i32, i32) {
    %c0_i32 = arith.constant 0 : i32
    %c0_i32_0 = arith.constant 0 : i32
    %c0_i32_1 = arith.constant 0 : i32
    return %c0_i32, %c0_i32_0 : i32, i32
  }
  func.func @transform_5(%arg0: i32) -> (i32, i32) {
    %c0_i32 = arith.constant 0 : i32
    %c0_i32_0 = arith.constant 0 : i32
    return %arg0, %c0_i32 : i32, i32
  }
}

</mosaic_0001>

<bundles_post_ra>
// kernel: tpu_custom_call.1
= control target key start
LH: loop header
LB: loop body
LE: loop exit
PB: predicated region body
PF: predicated region fallthrough
CT: control target
= control target key end

     0   :  { %10 = vsyncpa [#allocation3], 0  ;;  %s4240_s0 = inlined_call_operand.hbm [shape: f32[8,1280], index: 0, kind: input, shape index: {}]   ;;  %s4241_s1 = inlined_call_operand.hbm [shape: bf16[1280,512], index: 1, kind: input, shape index: {}]   ;;  %s4242_s2 = inlined_call_operand.hbm [shape: f32[1,512], index: 2, kind: input, shape index: {}]   ;;  %s4243_s3 = inlined_call_operand.hbm [shape: bf16[512,128], index: 3, kind: input, shape index: {}]   ;;  %s4244_s4 = inlined_call_operand.hbm [shape: f32[1,128], index: 4, kind: input, shape index: {}]   ;;  %s4245_s5 = inlined_call_operand.hbm [shape: bf16[8,128], index: 5, kind: output, shape index: {}]  }
   0x1   :  { %11 = vsyncpa [#allocation6], 0 }
   0x2   :  { %12 = vsyncpa [#allocation9], 0 }
   0x3   :  { %13 = vsyncpa [#allocation4], 0 }
   0x4   :  { %18 = vsyncadd [#allocation3], 1280  ;;  %s4064_s18 = smov [#allocation5]   ;;  %s3924_s22 = scalar_lea.hbm %s4241_s1, 40960 }
   0x5   :  { %s31_s19 = sshll.u32 %s4064_s18, 4  ;;  %p3925_p0 = scmp.ne.s32.totalorder %s4241_s1, %s3924_s22  ;;  %s32_s19 = int_to_ptr.vmem [resolvable:$true] %s31_s19 }
   0x6   :  { %p3928_p1 = scmp.lt.u32.totalorder %s3924_s22, %s4241_s1 }
   0x8   :  { %p3930_p2 = pnand %p3928_p1, %p3925_p0 }
   0xa   :  { %3933 = shalt.err (!%p3930_p2)
}
   0xb   :  { %s3934_s27 = scalar_lea.vmem %s32_s19, 40960  ;;  %p3939_p4 = scmp.lt.s32.totalorder %s32_s19, %s32_s19 }
   0xc   :  { %p3935_p3 = scmp.ne.s32.totalorder %s32_s19, %s3934_s27  ;;  %p3940_p5 = scmp.lt.s32.totalorder %s3934_s27, %s3934_s27 }
   0xe   :  { %p3941_p6 = por %p3940_p5, %p3939_p4 }
  0x10   :  { %p3942_p7 = pnand %p3941_p6, %p3935_p3 }
  0x12   :  { %3945 = shalt.err (!%p3942_p7)
}
  0x13   :  { %s4065_s28 = smov 256   ;;  %s4066_s29 = smov 16  }
  0x14   :  { %37 = dma.hbm_to_vmem [thread:$0]  %s4241_s1, 40960, %s32_s19, [#allocation6], %s4065_s28, %s4065_s28, %s4066_s29  }
  0x15   :  { %s4067_s7 = smov [#allocation8]   ;;  %s3946_s11 = scalar_lea.hbm %s4243_s3, 4096 }
  0x16   :  { %s53_s8 = sshll.u32 %s4067_s7, 4  ;;  %p3947_p8 = scmp.ne.s32.totalorder %s4243_s3, %s3946_s11  ;;  %s54_s8 = int_to_ptr.vmem [resolvable:$true] %s53_s8 }
  0x17   :  { %p3950_p9 = scmp.lt.u32.totalorder %s3946_s11, %s4243_s3 }
  0x19   :  { %p3952_p10 = pnand %p3950_p9, %p3947_p8 }
  0x1b   :  { %3955 = shalt.err (!%p3952_p10)
}
  0x1c   :  { %s3956_s16 = scalar_lea.vmem %s54_s8, 4096  ;;  %p3961_p12 = scmp.lt.s32.totalorder %s54_s8, %s54_s8 }
  0x1d   :  { %p3957_p11 = scmp.ne.s32.totalorder %s54_s8, %s3956_s16  ;;  %p3962_p13 = scmp.lt.s32.totalorder %s3956_s16, %s3956_s16 }
  0x1f   :  { %p3963_p0 = por %p3962_p13, %p3961_p12 }
  0x21   :  { %p3964_p1 = pnand %p3963_p0, %p3957_p11 }
  0x23   :  { %3967 = shalt.err (!%p3964_p1)
}
  0x24   :  { %s4068_s1 = smov 64   ;;  %s4069_s17 = smov 4  }
  0x25   :  { %59 = dma.hbm_to_vmem [thread:$0]  %s4243_s3, 4096, %s54_s8, [#allocation9], %s4068_s1, %s4068_s1, %s4069_s17  }
  0x26   :  { %s4070_s20 = smov [#allocation2]   ;;  %s3968_s24 = scalar_lea.hbm %s4240_s0, 1280 }
  0x27   :  { %s19_s21 = sshll.u32 %s4070_s20, 4  ;;  %p3969_p2 = scmp.ne.s32.totalorder %s4240_s0, %s3968_s24  ;;  %s20_s21 = int_to_ptr.vmem [resolvable:$true] %s19_s21 }
  0x28   :  { %p3972_p3 = scmp.lt.u32.totalorder %s3968_s24, %s4240_s0 }
  0x2a   :  { %p3974_p4 = pnand %p3972_p3, %p3969_p2 }
  0x2c   :  { %3977 = shalt.err (!%p3974_p4)
}
  0x2d   :  { %s3978_s29 = scalar_lea.vmem %s20_s21, 1280  ;;  %s3982_s3 = scalar_lea.vmem %s20_s21, 2560 }
  0x2e   :  { %p3979_p5 = scmp.ne.s32.totalorder %s20_s21, %s3978_s29  ;;  %p3983_p6 = scmp.lt.s32.totalorder %s20_s21, %s20_s21 }
  0x2f   :  { %p3984_p7 = scmp.lt.s32.totalorder %s3982_s3, %s3978_s29 }
  0x31   :  { %p3985_p8 = por %p3984_p7, %p3983_p6 }
  0x33   :  { %p3986_p9 = pnand %p3985_p8, %p3979_p5 }
  0x35   :  { %3989 = shalt.err (!%p3986_p9)
}
  0x36   :  { %s4071_s30 = smov 1280   ;;  %s4072_s6 = smov 80  }
  0x37   :  { %25 = dma.hbm_to_vmem [thread:$0]  %s4240_s0, 1280, %s20_s21, [#allocation3], %s4071_s30, %s4071_s30, %s4072_s6  }
  0x38   :  { %s4073_s9 = smov [#allocation7]   ;;  %s4074_s11 = smov [#allocation10]  }
  0x39   :  { %s44_s10 = sshll.u32 %s4073_s9, 4  ;;  %s66_s12 = sshll.u32 %s4074_s11, 4  ;;  %s45_s10 = int_to_ptr.vmem [resolvable:$true] %s44_s10  ;;  %s67_s12 = int_to_ptr.vmem [resolvable:$true] %s66_s12 }
  0x3a   :  { %s3990_s15 = scalar_lea.hbm %s4242_s2, 64 }
  0x3b   :  { %p3991_p10 = scmp.ne.s32.totalorder %s4242_s2, %s3990_s15  ;;  %p3994_p11 = scmp.lt.u32.totalorder %s3990_s15, %s4242_s2 }
  0x3d   :  { %p3996_p12 = pnand %p3994_p11, %p3991_p10 }
  0x3f   :  { %3999 = shalt.err (!%p3996_p12)
}
  0x40   :  { %s4000_s0 = scalar_lea.vmem %s45_s10, 64  ;;  %p4005_p0 = scmp.lt.s32.totalorder %s45_s10, %s45_s10 }
  0x41   :  { %p4001_p13 = scmp.ne.s32.totalorder %s45_s10, %s4000_s0  ;;  %p4006_p1 = scmp.lt.s32.totalorder %s4000_s0, %s4000_s0 }
  0x43   :  { %p4007_p2 = por %p4006_p1, %p4005_p0 }
  0x45   :  { %p4008_p3 = pnand %p4007_p2, %p4001_p13 }
  0x47   :  { %4011 = shalt.err (!%p4008_p3)
}
  0x48   :  { %47 = dma.hbm_to_vmem [thread:$0]  %s4242_s2, 64, %s45_s10, [#allocation6]  }
  0x49   :  { %s4012_s25 = scalar_lea.hbm %s4244_s4, 16 }
  0x4a   :  { %p4013_p4 = scmp.ne.s32.totalorder %s4244_s4, %s4012_s25  ;;  %p4016_p5 = scmp.lt.u32.totalorder %s4012_s25, %s4244_s4 }
  0x4c   :  { %p4018_p6 = pnand %p4016_p5, %p4013_p4 }
  0x4e   :  { %4021 = shalt.err (!%p4018_p6)
}
  0x4f   :  { %s4022_s3 = scalar_lea.vmem %s67_s12, 16  ;;  %s4026_s30 = scalar_lea.vmem %s67_s12, 32 }
  0x50   :  { %p4023_p7 = scmp.ne.s32.totalorder %s67_s12, %s4022_s3  ;;  %p4027_p8 = scmp.lt.s32.totalorder %s67_s12, %s67_s12 }
  0x51   :  { %p4028_p9 = scmp.lt.s32.totalorder %s4026_s30, %s4022_s3 }
  0x53   :  { %p4029_p10 = por %p4028_p9, %p4027_p8 }
  0x55   :  { %p4030_p11 = pnand %p4029_p10, %p4023_p7 }
  0x57   :  { %4033 = shalt.err (!%p4030_p11)
}
  0x58   :  { %69 = dma.hbm_to_vmem [thread:$0]  %s4244_s4, 16, %s67_s12, [#allocation9]  }
  0x59   :  { %4056 = dma.done.wait [#allocation3], 2560  }
  0x5a   :  { %4057 = vsyncadd [#allocation3], 4294964736 }
  0x5b   :  { %4058 = dma.done.wait [#allocation6], 41024  }
  0x5c   :  { %4059 = vsyncadd [#allocation6], 4294926272 }
  0x5d   :  { %4060 = dma.done.wait [#allocation9], 4112  }
  0x5e   :  { %4061 = vsyncadd [#allocation9], 4294963184  ;;  %v3396_v0 = vld [vmem:[#allocation5 + $0x4] ss:$16 sps:$4 sm:$0xff]   ;;  %v3398_v1 = vld [vmem:[#allocation5 + $0xc] ss:$16 sps:$4 sm:$0xff]  }
  0x5f   :  { %2058 = vmatprep.subr.bf16.mxu0 %v3396_v0  ;;  %v3400_v2 = vld [vmem:[#allocation5] ss:$16 sps:$4 sm:$0xff]   ;;  %v3401_v3 = vld [vmem:[#allocation5 + $0x8] ss:$16 sps:$4 sm:$0xff]   ;;  %2273 = vmatprep.subr.bf16.mxu1 %v3398_v1  ;;  %v3402_v4 = vld [vmem:[#allocation5 + $0x24] ss:$16 sps:$4 sm:$0xff]  }
  0x60   :  { %2059 = vmatpush1.bf16.msra.mxu0 %v3400_v2  ;;  %2274 = vmatpush1.bf16.msra.mxu1 %v3401_v3  ;;  %v3404_v5 = vld [vmem:[#allocation5 + $0x2c] ss:$16 sps:$4 sm:$0xff]   ;;  %v3406_v6 = vld [vmem:[#allocation5 + $0x20] ss:$16 sps:$4 sm:$0xff]   ;;  %v3407_v7 = vld [vmem:[#allocation5 + $0x28] ss:$16 sps:$4 sm:$0xff]  }
  0x61   :  { %2060 = vmatprep.subr.bf16.mxu0 %v3402_v4  ;;  %2275 = vmatprep.subr.bf16.mxu1 %v3404_v5  ;;  %v3408_v8 = vld [vmem:[#allocation5 + $0x44] ss:$16 sps:$4 sm:$0xff]   ;;  %v3410_v9 = vld [vmem:[#allocation5 + $0x4c] ss:$16 sps:$4 sm:$0xff]   ;;  %v3412_v10 = vld [vmem:[#allocation5 + $0x40] ss:$16 sps:$4 sm:$0xff]  }
  0x62   :  { %v3413_v11 = vld [vmem:[#allocation5 + $0x48] ss:$16 sps:$4 sm:$0xff]   ;;  %v3414_v12 = vld [vmem:[#allocation5 + $0x64] ss:$16 sps:$4 sm:$0xff]   ;;  %v3416_v13 = vld [vmem:[#allocation5 + $0x6c] ss:$16 sps:$4 sm:$0xff]  }
  0x63   :  { %v3418_v14 = vld [vmem:[#allocation5 + $0x60] ss:$16 sps:$4 sm:$0xff]   ;;  %v3419_v15 = vld [vmem:[#allocation5 + $0x68] ss:$16 sps:$4 sm:$0xff]   ;;  %v3420_v16 = vld [vmem:[#allocation5 + $0x84] ss:$16 sps:$4 sm:$0xff]  }
  0x64   :  { %2061 = vmatpush1.bf16.msra.mxu0 %v3406_v6  ;;  %2276 = vmatpush1.bf16.msra.mxu1 %v3407_v7  ;;  %v3422_v17 = vld [vmem:[#allocation5 + $0x8c] ss:$16 sps:$4 sm:$0xff]   ;;  %v3424_v18 = vld [vmem:[#allocation5 + $0x80] ss:$16 sps:$4 sm:$0xff]   ;;  %v3425_v19 = vld [vmem:[#allocation5 + $0x88] ss:$16 sps:$4 sm:$0xff]  }
  0x65   :  { %2062 = vmatprep.subr.bf16.mxu0 %v3408_v8  ;;  %2277 = vmatprep.subr.bf16.mxu1 %v3410_v9  ;;  %v3426_v20 = vld [vmem:[#allocation5 + $0xa4] ss:$16 sps:$4 sm:$0xff]   ;;  %v3428_v21 = vld [vmem:[#allocation5 + $0xac] ss:$16 sps:$4 sm:$0xff]   ;;  %v3430_v22 = vld [vmem:[#allocation5 + $0xa0] ss:$16 sps:$4 sm:$0xff]  }
  0x66   :  { %v3431_v23 = vld [vmem:[#allocation5 + $0xa8] ss:$16 sps:$4 sm:$0xff]   ;;  %v3432_v24 = vld [vmem:[#allocation5 + $0xc4] ss:$16 sps:$4 sm:$0xff]   ;;  %v3434_v25 = vld [vmem:[#allocation5 + $0xcc] ss:$16 sps:$4 sm:$0xff]  }
  0x67   :  { %v3436_v26 = vld [vmem:[#allocation5 + $0xc0] ss:$16 sps:$4 sm:$0xff]   ;;  %v3437_v27 = vld [vmem:[#allocation5 + $0xc8] ss:$16 sps:$4 sm:$0xff]   ;;  %v3438_v28 = vld [vmem:[#allocation5 + $0xe4] ss:$16 sps:$4 sm:$0xff]  }
  0x68   :  { %2063 = vmatpush1.bf16.msra.mxu0 %v3412_v10  ;;  %2278 = vmatpush1.bf16.msra.mxu1 %v3413_v11  ;;  %v3440_v29 = vld [vmem:[#allocation5 + $0xec] ss:$16 sps:$4 sm:$0xff]   ;;  %v3442_v30 = vld [vmem:[#allocation5 + $0xe0] ss:$16 sps:$4 sm:$0xff]   ;;  %v3443_v31 = vld [vmem:[#allocation5 + $0xe8] ss:$16 sps:$4 sm:$0xff]  }
  0x69   :  { %2064 = vmatprep.subr.bf16.mxu0 %v3414_v12  ;;  %2279 = vmatprep.subr.bf16.mxu1 %v3416_v13  ;;  %v3444_v32 = vld [vmem:[#allocation5 + $0x104] ss:$16 sps:$4 sm:$0xff]   ;;  %v3446_v33 = vld [vmem:[#allocation5 + $0x10c] ss:$16 sps:$4 sm:$0xff]   ;;  %v3448_v34 = vld [vmem:[#allocation5 + $0x100] ss:$16 sps:$4 sm:$0xff]  }
  0x6a   :  { %v3449_v35 = vld [vmem:[#allocation5 + $0x108] ss:$16 sps:$4 sm:$0xff]   ;;  %v3450_v36 = vld [vmem:[#allocation5 + $0x124] ss:$16 sps:$4 sm:$0xff]   ;;  %v3452_v37 = vld [vmem:[#allocation5 + $0x12c] ss:$16 sps:$4 sm:$0xff]  }
  0x6b   :  { %v3454_v38 = vld [vmem:[#allocation5 + $0x120] ss:$16 sps:$4 sm:$0xff]   ;;  %v3455_v39 = vld [vmem:[#allocation5 + $0x128] ss:$16 sps:$4 sm:$0xff]   ;;  %v3456_v40 = vld [vmem:[#allocation5 + $0x144] ss:$16 sps:$4 sm:$0xff]  }
  0x6c   :  { %2065 = vmatpush1.bf16.msra.mxu0 %v3418_v14  ;;  %2280 = vmatpush1.bf16.msra.mxu1 %v3419_v15  ;;  %v3458_v41 = vld [vmem:[#allocation5 + $0x14c] ss:$16 sps:$4 sm:$0xff]   ;;  %v3460_v42 = vld [vmem:[#allocation5 + $0x140] ss:$16 sps:$4 sm:$0xff]   ;;  %v3461_v43 = vld [vmem:[#allocation5 + $0x148] ss:$16 sps:$4 sm:$0xff]  }
  0x6d   :  { %2066 = vmatprep.subr.bf16.mxu0 %v3420_v16  ;;  %2281 = vmatprep.subr.bf16.mxu1 %v3422_v17  ;;  %v3462_v44 = vld [vmem:[#allocation5 + $0x164] ss:$16 sps:$4 sm:$0xff]   ;;  %v3464_v45 = vld [vmem:[#allocation5 + $0x16c] ss:$16 sps:$4 sm:$0xff]   ;;  %v3466_v48 = vld [vmem:[#allocation5 + $0x160] ss:$16 sps:$4 sm:$0xff]  }
  0x6e   :  { %v87_v46 = vld [vmem:[#allocation2 + $0x8] sm:$0xff]  ;;  %v97_v47 = vld [vmem:[#allocation2 + $0x58] sm:$0xff]  ;;  %v3468_v51 = vld [vmem:[#allocation5 + $0x184] ss:$16 sps:$4 sm:$0xff]  }
  0x6f   :  { %v3467_v49 = vld [vmem:[#allocation5 + $0x168] ss:$16 sps:$4 sm:$0xff]   ;;  %v107_v50 = vpack.c.bf16 %v97_v47, %v87_v46  ;;  %v3470_v52 = vld [vmem:[#allocation5 + $0x18c] ss:$16 sps:$4 sm:$0xff]   ;;  %v3472_v53 = vld [vmem:[#allocation5 + $0x180] ss:$16 sps:$4 sm:$0xff]  }
  0x70   :  { %2067 = vmatpush1.bf16.msra.mxu0 %v3424_v18  ;;  %2282 = vmatpush1.bf16.msra.mxu1 %v3425_v19  ;;  %v3473_v54 = vld [vmem:[#allocation5 + $0x188] ss:$16 sps:$4 sm:$0xff]   ;;  %v3474_v55 = vld [vmem:[#allocation5 + $0x1a4] ss:$16 sps:$4 sm:$0xff]   ;;  %v3476_v56 = vld [vmem:[#allocation5 + $0x1ac] ss:$16 sps:$4 sm:$0xff]  }
  0x71   :  { %2068 = vmatprep.subr.bf16.mxu0 %v3426_v20  ;;  %2283 = vmatprep.subr.bf16.mxu1 %v3428_v21  ;;  %v3478_v57 = vld [vmem:[#allocation5 + $0x1a0] ss:$16 sps:$4 sm:$0xff]   ;;  %v3479_v58 = vld [vmem:[#allocation5 + $0x1a8] ss:$16 sps:$4 sm:$0xff]   ;;  %v3480_v59 = vld [vmem:[#allocation5 + $0x1c4] ss:$16 sps:$4 sm:$0xff]  }
  0x72   :  { %2090 = vmatprep.mubr.bf16.mxu0 %v107_v50  ;;  %2305 = vmatprep.mubr.bf16.mxu1 %v107_v50  ;;  %v3482_v60 = vld [vmem:[#allocation5 + $0x1cc] ss:$16 sps:$4 sm:$0xff]   ;;  %v3484_v61 = vld [vmem:[#allocation5 + $0x1c0] ss:$16 sps:$4 sm:$0xff]   ;;  %v3485_v62 = vld [vmem:[#allocation5 + $0x1c8] ss:$16 sps:$4 sm:$0xff]  }
  0x73   :  { %v3486_v63 = vld [vmem:[#allocation5 + $0x1e4] ss:$16 sps:$4 sm:$0xff]   ;;  %v3488_v0 = vld [vmem:[#allocation5 + $0x1ec] ss:$16 sps:$4 sm:$0xff]   ;;  %v3490_v1 = vld [vmem:[#allocation5 + $0x1e0] ss:$16 sps:$4 sm:$0xff]  }
  0x74   :  { %2069 = vmatpush1.bf16.msra.mxu0 %v3430_v22  ;;  %2284 = vmatpush1.bf16.msra.mxu1 %v3431_v23  ;;  %v3491_v2 = vld [vmem:[#allocation5 + $0x1e8] ss:$16 sps:$4 sm:$0xff]   ;;  %v3494_v3 = vld [vmem:[#allocation5 + $0x204] ss:$16 sps:$4 sm:$0xff]   ;;  %v3497_v6 = vld [vmem:[#allocation5 + $0x20c] ss:$16 sps:$4 sm:$0xff]  }
  0x75   :  { %2070 = vmatprep.subr.bf16.mxu0 %v3432_v24  ;;  %2285 = vmatprep.subr.bf16.mxu1 %v3434_v25  ;;  %v86_v4 = vld [vmem:[#allocation2] sm:$0xff]  ;;  %v96_v5 = vld [vmem:[#allocation2 + $0x50] sm:$0xff]  ;;  %v3495_v8 = vld [vmem:[#allocation5 + $0x208] ss:$16 sps:$4 sm:$0xff]  }
  0x76   :  { %v3492_v7 = vld [vmem:[#allocation5 + $0x200] ss:$16 sps:$4 sm:$0xff]   ;;  %v106_v9 = vpack.c.bf16 %v96_v5, %v86_v4  ;;  %v3500_v10 = vld [vmem:[#allocation5 + $0x224] ss:$16 sps:$4 sm:$0xff]   ;;  %v3503_v11 = vld [vmem:[#allocation5 + $0x22c] ss:$16 sps:$4 sm:$0xff]  }
  0x77   :  { %v3498_v12 = vld [vmem:[#allocation5 + $0x220] ss:$16 sps:$4 sm:$0xff]   ;;  %v3501_v13 = vld [vmem:[#allocation5 + $0x228] ss:$16 sps:$4 sm:$0xff]   ;;  %v3506_v14 = vld [vmem:[#allocation5 + $0x244] ss:$16 sps:$4 sm:$0xff]  }
  0x78   :  { %2071 = vmatpush1.bf16.msra.mxu0 %v3436_v26  ;;  %2286 = vmatpush1.bf16.msra.mxu1 %v3437_v27  ;;  %v3509_v15 = vld [vmem:[#allocation5 + $0x24c] ss:$16 sps:$4 sm:$0xff]   ;;  %v3504_v16 = vld [vmem:[#allocation5 + $0x240] ss:$16 sps:$4 sm:$0xff]   ;;  %v3507_v17 = vld [vmem:[#allocation5 + $0x248] ss:$16 sps:$4 sm:$0xff]  }
  0x79   :  { %2072 = vmatprep.subr.bf16.mxu0 %v3438_v28  ;;  %2287 = vmatprep.subr.bf16.mxu1 %v3440_v29  ;;  %v3512_v18 = vld [vmem:[#allocation5 + $0x264] ss:$16 sps:$4 sm:$0xff]   ;;  %v3515_v19 = vld [vmem:[#allocation5 + $0x26c] ss:$16 sps:$4 sm:$0xff]   ;;  %v3510_v20 = vld [vmem:[#allocation5 + $0x260] ss:$16 sps:$4 sm:$0xff]  }
  0x7a   :  { %v3513_v21 = vld [vmem:[#allocation5 + $0x268] ss:$16 sps:$4 sm:$0xff]   ;;  %v3518_v22 = vld [vmem:[#allocation5 + $0x284] ss:$16 sps:$4 sm:$0xff]   ;;  %v3521_v23 = vld [vmem:[#allocation5 + $0x28c] ss:$16 sps:$4 sm:$0xff]  }
  0x7b   :  { %v3516_v24 = vld [vmem:[#allocation5 + $0x280] ss:$16 sps:$4 sm:$0xff]   ;;  %v3519_v25 = vld [vmem:[#allocation5 + $0x288] ss:$16 sps:$4 sm:$0xff]   ;;  %v3524_v26 = vld [vmem:[#allocation5 + $0x2a4] ss:$16 sps:$4 sm:$0xff]  }
  0x7c   :  { %2073 = vmatpush1.bf16.msra.mxu0 %v3442_v30  ;;  %2288 = vmatpush1.bf16.msra.mxu1 %v3443_v31  ;;  %v3527_v27 = vld [vmem:[#allocation5 + $0x2ac] ss:$16 sps:$4 sm:$0xff]   ;;  %v3522_v28 = vld [vmem:[#allocation5 + $0x2a0] ss:$16 sps:$4 sm:$0xff]   ;;  %v3525_v29 = vld [vmem:[#allocation5 + $0x2a8] ss:$16 sps:$4 sm:$0xff]  }
  0x7d   :  { %2074 = vmatprep.subr.bf16.mxu0 %v3444_v32  ;;  %2289 = vmatprep.subr.bf16.mxu1 %v3446_v33  ;;  %v3530_v30 = vld [vmem:[#allocation5 + $0x2c4] ss:$16 sps:$4 sm:$0xff]   ;;  %v3533_v31 = vld [vmem:[#allocation5 + $0x2cc] ss:$16 sps:$4 sm:$0xff]   ;;  %v3546_v47 = vld [vmem:[#allocation5 + $0x320] ss:$16 sps:$4 sm:$0xff]  }
  0x7e   :  { %v89_v32 = vld [vmem:[#allocation2 + $0x18] sm:$0xff]  ;;  %v99_v33 = vld [vmem:[#allocation2 + $0x68] sm:$0xff]  ;;  %v3584_v5 = vld [vmem:[#allocation5 + $0x3e4] ss:$16 sps:$4 sm:$0xff]  }
  0x7f   :  { %v3551_v46 = vld [vmem:[#allocation5 + $0x32c] ss:$16 sps:$4 sm:$0xff]   ;;  %v3579_v4 = vld [vmem:[#allocation5 + $0x3c8] ss:$16 sps:$4 sm:$0xff]  }
  0x80   :  { %2075 = vmatpush1.bf16.msra.mxu0 %v3448_v34  ;;  %2290 = vmatpush1.bf16.msra.mxu1 %v3449_v35  ;;  %v3528_v34 = vld [vmem:[#allocation5 + $0x2c0] ss:$16 sps:$4 sm:$0xff]   ;;  %v3531_v35 = vld [vmem:[#allocation5 + $0x2c8] ss:$16 sps:$4 sm:$0xff]   ;;  %v3557_v50 = vld [vmem:[#allocation5 + $0x34c] ss:$16 sps:$4 sm:$0xff]  }
  0x81   :  { %2076 = vmatprep.subr.bf16.mxu0 %v3450_v36  ;;  %2291 = vmatprep.subr.bf16.mxu1 %v3452_v37  ;;  %v109_v36 = vpack.c.bf16 %v99_v33, %v89_v32  ;;  %v3536_v37 = vld [vmem:[#allocation5 + $0x2e4] ss:$16 sps:$4 sm:$0xff]   ;;  %v3617_v32 = vld [vmem:[#allocation5 + $0x48c] ss:$16 sps:$4 sm:$0xff]   ;;  %v3612_v33 = vld [vmem:[#allocation5 + $0x480] ss:$16 sps:$4 sm:$0xff]  }
  0x84   :  { %2077 = vmatpush1.bf16.msra.mxu0 %v3454_v38  ;;  %2292 = vmatpush1.bf16.msra.mxu1 %v3455_v39  ;;  %v3539_v38 = vld [vmem:[#allocation5 + $0x2ec] ss:$16 sps:$4 sm:$0xff]   ;;  %v3534_v39 = vld [vmem:[#allocation5 + $0x2e0] ss:$16 sps:$4 sm:$0xff]  }
  0x85   :  { %2078 = vmatprep.subr.bf16.mxu0 %v3456_v40  ;;  %2293 = vmatprep.subr.bf16.mxu1 %v3458_v41  ;;  %v3537_v40 = vld [vmem:[#allocation5 + $0x2e8] ss:$16 sps:$4 sm:$0xff]   ;;  %v3542_v41 = vld [vmem:[#allocation5 + $0x304] ss:$16 sps:$4 sm:$0xff]  }
  0x88   :  { %2079 = vmatpush1.bf16.msra.mxu0 %v3460_v42  ;;  %2294 = vmatpush1.bf16.msra.mxu1 %v3461_v43  ;;  %v3545_v42 = vld [vmem:[#allocation5 + $0x30c] ss:$16 sps:$4 sm:$0xff]   ;;  %v3540_v43 = vld [vmem:[#allocation5 + $0x300] ss:$16 sps:$4 sm:$0xff]  }
  0x89   :  { %2080 = vmatprep.subr.bf16.mxu0 %v3462_v44  ;;  %2295 = vmatprep.subr.bf16.mxu1 %v3464_v45  ;;  %v3543_v44 = vld [vmem:[#allocation5 + $0x308] ss:$16 sps:$4 sm:$0xff]   ;;  %v3548_v45 = vld [vmem:[#allocation5 + $0x324] ss:$16 sps:$4 sm:$0xff]  }
  0x8c   :  { %2081 = vmatpush1.bf16.msra.mxu0 %v3466_v48  ;;  %2296 = vmatpush1.bf16.msra.mxu1 %v3467_v49  ;;  %v3549_v48 = vld [vmem:[#allocation5 + $0x328] ss:$16 sps:$4 sm:$0xff]   ;;  %v3554_v49 = vld [vmem:[#allocation5 + $0x344] ss:$16 sps:$4 sm:$0xff]  }
  0x8d   :  { %2082 = vmatprep.subr.bf16.mxu0 %v3468_v51  ;;  %2297 = vmatprep.subr.bf16.mxu1 %v3470_v52  ;;  %v3552_v51 = vld [vmem:[#allocation5 + $0x340] ss:$16 sps:$4 sm:$0xff]   ;;  %v3555_v52 = vld [vmem:[#allocation5 + $0x348] ss:$16 sps:$4 sm:$0xff]  }
  0x90   :  { %2083 = vmatpush1.bf16.msra.mxu0 %v3472_v53  ;;  %2298 = vmatpush1.bf16.msra.mxu1 %v3473_v54  ;;  %v3560_v53 = vld [vmem:[#allocation5 + $0x364] ss:$16 sps:$4 sm:$0xff]   ;;  %v3563_v54 = vld [vmem:[#allocation5 + $0x36c] ss:$16 sps:$4 sm:$0xff]  }
  0x91   :  { %2084 = vmatprep.subr.bf16.mxu0 %v3474_v55  ;;  %2299 = vmatprep.subr.bf16.mxu1 %v3476_v56  ;;  %v3558_v55 = vld [vmem:[#allocation5 + $0x360] ss:$16 sps:$4 sm:$0xff]   ;;  %v3561_v56 = vld [vmem:[#allocation5 + $0x368] ss:$16 sps:$4 sm:$0xff]  }
  0x94   :  { %2085 = vmatpush1.bf16.msra.mxu0 %v3478_v57  ;;  %2300 = vmatpush1.bf16.msra.mxu1 %v3479_v58  ;;  %v3566_v57 = vld [vmem:[#allocation5 + $0x384] ss:$16 sps:$4 sm:$0xff]   ;;  %v3569_v58 = vld [vmem:[#allocation5 + $0x38c] ss:$16 sps:$4 sm:$0xff]  }
  0x95   :  { %2086 = vmatprep.subr.bf16.mxu0 %v3480_v59  ;;  %2301 = vmatprep.subr.bf16.mxu1 %v3482_v60  ;;  %v3564_v59 = vld [vmem:[#allocation5 + $0x380] ss:$16 sps:$4 sm:$0xff]   ;;  %v3567_v60 = vld [vmem:[#allocation5 + $0x388] ss:$16 sps:$4 sm:$0xff]  }
  0x98   :  { %2087 = vmatpush1.bf16.msra.mxu0 %v3484_v61  ;;  %2302 = vmatpush1.bf16.msra.mxu1 %v3485_v62  ;;  %v3572_v61 = vld [vmem:[#allocation5 + $0x3a4] ss:$16 sps:$4 sm:$0xff]   ;;  %v3575_v62 = vld [vmem:[#allocation5 + $0x3ac] ss:$16 sps:$4 sm:$0xff]  }
  0x99   :  { %2088 = vmatprep.subr.bf16.mxu0 %v3486_v63  ;;  %2303 = vmatprep.subr.bf16.mxu1 %v3488_v0  ;;  %v3570_v63 = vld [vmem:[#allocation5 + $0x3a0] ss:$16 sps:$4 sm:$0xff]   ;;  %v3573_v0 = vld [vmem:[#allocation5 + $0x3a8] ss:$16 sps:$4 sm:$0xff]  }
  0x9c   :  { %2089 = vmatpush1.bf16.msra.mxu0 %v3490_v1  ;;  %2304 = vmatpush1.bf16.msra.mxu1 %v3491_v2  ;;  %v3578_v1 = vld [vmem:[#allocation5 + $0x3c4] ss:$16 sps:$4 sm:$0xff]   ;;  %v3581_v2 = vld [vmem:[#allocation5 + $0x3cc] ss:$16 sps:$4 sm:$0xff]  }
  0x9d   :  { %2101 = vmatprep.subr.bf16.mxu0 %v3494_v3  ;;  %2316 = vmatprep.subr.bf16.mxu1 %v3497_v6  ;;  %v3576_v3 = vld [vmem:[#allocation5 + $0x3c0] ss:$16 sps:$4 sm:$0xff]   ;;  %v3587_v6 = vld [vmem:[#allocation5 + $0x3ec] ss:$16 sps:$4 sm:$0xff]  }
  0x9f   :  { %2091 = vmatmul.mubr.bf16.vlgmr.msra.gmra.mrb[0].mxu0 %v106_v9  ;;  %2306 = vmatmul.mubr.bf16.vlgmr.msra.gmra.mrb[0].mxu1 %v106_v9  ;;  %v3590_v9 = vld [vmem:[#allocation5 + $0x404] ss:$16 sps:$4 sm:$0xff]  }
  0xa0   :  { %2102 = vmatpush1.bf16.msra.mxu0 %v3492_v7  ;;  %2317 = vmatpush1.bf16.msra.mxu1 %v3495_v8  ;;  %v3582_v7 = vld [vmem:[#allocation5 + $0x3e0] ss:$16 sps:$4 sm:$0xff]   ;;  %v3585_v8 = vld [vmem:[#allocation5 + $0x3e8] ss:$16 sps:$4 sm:$0xff]  }
  0xa1   :  { %2103 = vmatprep.subr.bf16.mxu0 %v3500_v10  ;;  %2318 = vmatprep.subr.bf16.mxu1 %v3503_v11  ;;  %v88_v10 = vld [vmem:[#allocation2 + $0x10] sm:$0xff]  ;;  %v98_v11 = vld [vmem:[#allocation2 + $0x60] sm:$0xff] }
  0xa2   :  { %2133 = vmatprep.mubr.bf16.mxu0 %v109_v36  ;;  %2348 = vmatprep.mubr.bf16.mxu1 %v109_v36  ;;  %v3623_v36 = vld [vmem:[#allocation5 + $0x4ac] ss:$16 sps:$4 sm:$0xff]  }
  0xa4   :  { %2104 = vmatpush1.bf16.msra.mxu0 %v3498_v12  ;;  %2319 = vmatpush1.bf16.msra.mxu1 %v3501_v13  ;;  %v3593_v12 = vld [vmem:[#allocation5 + $0x40c] ss:$16 sps:$4 sm:$0xff]   ;;  %v3588_v13 = vld [vmem:[#allocation5 + $0x400] ss:$16 sps:$4 sm:$0xff]  }
  0xa5   :  { %2105 = vmatprep.subr.bf16.mxu0 %v3506_v14  ;;  %2320 = vmatprep.subr.bf16.mxu1 %v3509_v15  ;;  %v3591_v14 = vld [vmem:[#allocation5 + $0x408] ss:$16 sps:$4 sm:$0xff]   ;;  %v108_v15 = vpack.c.bf16 %v98_v11, %v88_v10  ;;  %v3680_v11 = vld [vmem:[#allocation5 + $0x5e4] ss:$16 sps:$4 sm:$0xff]  }
  0xa6   :  { %v3675_v10 = vld [vmem:[#allocation5 + $0x5c8] ss:$16 sps:$4 sm:$0xff]  }
  0xa8   :  { %2106 = vmatpush1.bf16.msra.mxu0 %v3504_v16  ;;  %2321 = vmatpush1.bf16.msra.mxu1 %v3507_v17  ;;  %v3596_v16 = vld [vmem:[#allocation5 + $0x424] ss:$16 sps:$4 sm:$0xff]   ;;  %v3599_v17 = vld [vmem:[#allocation5 + $0x42c] ss:$16 sps:$4 sm:$0xff]  }
  0xa9   :  { %2107 = vmatprep.subr.bf16.mxu0 %v3512_v18  ;;  %2322 = vmatprep.subr.bf16.mxu1 %v3515_v19  ;;  %v91_v18 = vld [vmem:[#allocation2 + $0x28] sm:$0xff]  ;;  %v101_v19 = vld [vmem:[#allocation2 + $0x78] sm:$0xff] }
  0xac   :  { %2108 = vmatpush1.bf16.msra.mxu0 %v3510_v20  ;;  %2323 = vmatpush1.bf16.msra.mxu1 %v3513_v21  ;;  %v3594_v20 = vld [vmem:[#allocation5 + $0x420] ss:$16 sps:$4 sm:$0xff]   ;;  %v3597_v21 = vld [vmem:[#allocation5 + $0x428] ss:$16 sps:$4 sm:$0xff]  }
  0xad   :  { %2109 = vmatprep.subr.bf16.mxu0 %v3518_v22  ;;  %2324 = vmatprep.subr.bf16.mxu1 %v3521_v23  ;;  %v111_v22 = vpack.c.bf16 %v101_v19, %v91_v18  ;;  %v3602_v23 = vld [vmem:[#allocation5 + $0x444] ss:$16 sps:$4 sm:$0xff]   ;;  %v3689_v18 = vld [vmem:[#allocation5 + $0x60c] ss:$16 sps:$4 sm:$0xff]   ;;  %v3684_v19 = vld [vmem:[#allocation5 + $0x600] ss:$16 sps:$4 sm:$0xff]  }
  0xb0   :  { %2110 = vmatpush1.bf16.msra.mxu0 %v3516_v24  ;;  %2325 = vmatpush1.bf16.msra.mxu1 %v3519_v25  ;;  %v3605_v24 = vld [vmem:[#allocation5 + $0x44c] ss:$16 sps:$4 sm:$0xff]   ;;  %v3600_v25 = vld [vmem:[#allocation5 + $0x440] ss:$16 sps:$4 sm:$0xff]  }
  0xb1   :  { %2111 = vmatprep.subr.bf16.mxu0 %v3524_v26  ;;  %2326 = vmatprep.subr.bf16.mxu1 %v3527_v27  ;;  %v3603_v26 = vld [vmem:[#allocation5 + $0x448] ss:$16 sps:$4 sm:$0xff]   ;;  %v3608_v27 = vld [vmem:[#allocation5 + $0x464] ss:$16 sps:$4 sm:$0xff]  }
  0xb4   :  { %2112 = vmatpush1.bf16.msra.mxu0 %v3522_v28  ;;  %2327 = vmatpush1.bf16.msra.mxu1 %v3525_v29  ;;  %v3611_v28 = vld [vmem:[#allocation5 + $0x46c] ss:$16 sps:$4 sm:$0xff]   ;;  %v3606_v29 = vld [vmem:[#allocation5 + $0x460] ss:$16 sps:$4 sm:$0xff]  }
  0xb5   :  { %2113 = vmatprep.subr.bf16.mxu0 %v3530_v30  ;;  %2328 = vmatprep.subr.bf16.mxu1 %v3533_v31  ;;  %v3609_v30 = vld [vmem:[#allocation5 + $0x468] ss:$16 sps:$4 sm:$0xff]   ;;  %v3614_v31 = vld [vmem:[#allocation5 + $0x484] ss:$16 sps:$4 sm:$0xff]  }
  0xb8   :  { %2114 = vmatpush1.bf16.msra.mxu0 %v3528_v34  ;;  %2329 = vmatpush1.bf16.msra.mxu1 %v3531_v35  ;;  %v3615_v34 = vld [vmem:[#allocation5 + $0x488] ss:$16 sps:$4 sm:$0xff]   ;;  %v3620_v35 = vld [vmem:[#allocation5 + $0x4a4] ss:$16 sps:$4 sm:$0xff]  }
  0xb9   :  { %2115 = vmatprep.subr.bf16.mxu0 %v3536_v37  ;;  %2330 = vmatprep.subr.bf16.mxu1 %v3539_v38  ;;  %v3618_v37 = vld [vmem:[#allocation5 + $0x4a0] ss:$16 sps:$4 sm:$0xff]   ;;  %v3621_v38 = vld [vmem:[#allocation5 + $0x4a8] ss:$16 sps:$4 sm:$0xff]  }
  0xbc   :  { %2116 = vmatpush1.bf16.msra.mxu0 %v3534_v39  ;;  %2331 = vmatpush1.bf16.msra.mxu1 %v3537_v40  ;;  %v3626_v39 = vld [vmem:[#allocation5 + $0x4c4] ss:$16 sps:$4 sm:$0xff]   ;;  %v3629_v40 = vld [vmem:[#allocation5 + $0x4cc] ss:$16 sps:$4 sm:$0xff]  }
  0xbd   :  { %2117 = vmatprep.subr.bf16.mxu0 %v3542_v41  ;;  %2332 = vmatprep.subr.bf16.mxu1 %v3545_v42  ;;  %v3624_v41 = vld [vmem:[#allocation5 + $0x4c0] ss:$16 sps:$4 sm:$0xff]   ;;  %v3627_v42 = vld [vmem:[#allocation5 + $0x4c8] ss:$16 sps:$4 sm:$0xff]  }
  0xc0   :  { %2118 = vmatpush1.bf16.msra.mxu0 %v3540_v43  ;;  %2333 = vmatpush1.bf16.msra.mxu1 %v3543_v44  ;;  %v3632_v43 = vld [vmem:[#allocation5 + $0x4e4] ss:$16 sps:$4 sm:$0xff]   ;;  %v3635_v44 = vld [vmem:[#allocation5 + $0x4ec] ss:$16 sps:$4 sm:$0xff]  }
  0xc1   :  { %2119 = vmatprep.subr.bf16.mxu0 %v3548_v45  ;;  %2334 = vmatprep.subr.bf16.mxu1 %v3551_v46  ;;  %v3630_v45 = vld [vmem:[#allocation5 + $0x4e0] ss:$16 sps:$4 sm:$0xff]   ;;  %v3633_v46 = vld [vmem:[#allocation5 + $0x4e8] ss:$16 sps:$4 sm:$0xff]  }
  0xc4   :  { %2120 = vmatpush1.bf16.msra.mxu0 %v3546_v47  ;;  %2335 = vmatpush1.bf16.msra.mxu1 %v3549_v48  ;;  %v3638_v47 = vld [vmem:[#allocation5 + $0x504] ss:$16 sps:$4 sm:$0xff]   ;;  %v3641_v48 = vld [vmem:[#allocation5 + $0x50c] ss:$16 sps:$4 sm:$0xff]  }
  0xc5   :  { %2121 = vmatprep.subr.bf16.mxu0 %v3554_v49  ;;  %2336 = vmatprep.subr.bf16.mxu1 %v3557_v50  ;;  %v3636_v49 = vld [vmem:[#allocation5 + $0x500] ss:$16 sps:$4 sm:$0xff]   ;;  %v3639_v50 = vld [vmem:[#allocation5 + $0x508] ss:$16 sps:$4 sm:$0xff]  }
  0xc8   :  { %2122 = vmatpush1.bf16.msra.mxu0 %v3552_v51  ;;  %2337 = vmatpush1.bf16.msra.mxu1 %v3555_v52  ;;  %v3644_v51 = vld [vmem:[#allocation5 + $0x524] ss:$16 sps:$4 sm:$0xff]   ;;  %v3647_v52 = vld [vmem:[#allocation5 + $0x52c] ss:$16 sps:$4 sm:$0xff]  }
  0xc9   :  { %2123 = vmatprep.subr.bf16.mxu0 %v3560_v53  ;;  %2338 = vmatprep.subr.bf16.mxu1 %v3563_v54  ;;  %v3642_v53 = vld [vmem:[#allocation5 + $0x520] ss:$16 sps:$4 sm:$0xff]   ;;  %v3645_v54 = vld [vmem:[#allocation5 + $0x528] ss:$16 sps:$4 sm:$0xff]  }
  0xcc   :  { %2124 = vmatpush1.bf16.msra.mxu0 %v3558_v55  ;;  %2339 = vmatpush1.bf16.msra.mxu1 %v3561_v56  ;;  %v3650_v55 = vld [vmem:[#allocation5 + $0x544] ss:$16 sps:$4 sm:$0xff]   ;;  %v3653_v56 = vld [vmem:[#allocation5 + $0x54c] ss:$16 sps:$4 sm:$0xff]  }
  0xcd   :  { %2125 = vmatprep.subr.bf16.mxu0 %v3566_v57  ;;  %2340 = vmatprep.subr.bf16.mxu1 %v3569_v58  ;;  %v3648_v57 = vld [vmem:[#allocation5 + $0x540] ss:$16 sps:$4 sm:$0xff]   ;;  %v3651_v58 = vld [vmem:[#allocation5 + $0x548] ss:$16 sps:$4 sm:$0xff]  }
  0xd0   :  { %2126 = vmatpush1.bf16.msra.mxu0 %v3564_v59  ;;  %2341 = vmatpush1.bf16.msra.mxu1 %v3567_v60  ;;  %v3656_v59 = vld [vmem:[#allocation5 + $0x564] ss:$16 sps:$4 sm:$0xff]   ;;  %v3659_v60 = vld [vmem:[#allocation5 + $0x56c] ss:$16 sps:$4 sm:$0xff]  }
  0xd1   :  { %2127 = vmatprep.subr.bf16.mxu0 %v3572_v61  ;;  %2342 = vmatprep.subr.bf16.mxu1 %v3575_v62  ;;  %v3654_v61 = vld [vmem:[#allocation5 + $0x560] ss:$16 sps:$4 sm:$0xff]   ;;  %v3657_v62 = vld [vmem:[#allocation5 + $0x568] ss:$16 sps:$4 sm:$0xff]  }
  0xd4   :  { %2128 = vmatpush1.bf16.msra.mxu0 %v3570_v63  ;;  %2343 = vmatpush1.bf16.msra.mxu1 %v3573_v0  ;;  %v3662_v63 = vld [vmem:[#allocation5 + $0x584] ss:$16 sps:$4 sm:$0xff]   ;;  %v3665_v0 = vld [vmem:[#allocation5 + $0x58c] ss:$16 sps:$4 sm:$0xff]  }
  0xd5   :  { %2129 = vmatprep.subr.bf16.mxu0 %v3578_v1  ;;  %2344 = vmatprep.subr.bf16.mxu1 %v3581_v2  ;;  %v3660_v1 = vld [vmem:[#allocation5 + $0x580] ss:$16 sps:$4 sm:$0xff]   ;;  %v3663_v2 = vld [vmem:[#allocation5 + $0x588] ss:$16 sps:$4 sm:$0xff]  }
  0xd8   :  { %2130 = vmatpush1.bf16.msra.mxu0 %v3576_v3  ;;  %2345 = vmatpush1.bf16.msra.mxu1 %v3579_v4  ;;  %v3668_v3 = vld [vmem:[#allocation5 + $0x5a4] ss:$16 sps:$4 sm:$0xff]   ;;  %v3671_v4 = vld [vmem:[#allocation5 + $0x5ac] ss:$16 sps:$4 sm:$0xff]  }
  0xd9   :  { %2131 = vmatprep.subr.bf16.mxu0 %v3584_v5  ;;  %2346 = vmatprep.subr.bf16.mxu1 %v3587_v6  ;;  %v3666_v5 = vld [vmem:[#allocation5 + $0x5a0] ss:$16 sps:$4 sm:$0xff]   ;;  %v3669_v6 = vld [vmem:[#allocation5 + $0x5a8] ss:$16 sps:$4 sm:$0xff]  }
  0xdc   :  { %2132 = vmatpush1.bf16.msra.mxu0 %v3582_v7  ;;  %2347 = vmatpush1.bf16.msra.mxu1 %v3585_v8  ;;  %v3674_v7 = vld [vmem:[#allocation5 + $0x5c4] ss:$16 sps:$4 sm:$0xff]   ;;  %v3677_v8 = vld [vmem:[#allocation5 + $0x5cc] ss:$16 sps:$4 sm:$0xff]  }
  0xdd   :  { %2144 = vmatprep.subr.bf16.mxu0 %v3590_v9  ;;  %2359 = vmatprep.subr.bf16.mxu1 %v3593_v12  ;;  %v3672_v9 = vld [vmem:[#allocation5 + $0x5c0] ss:$16 sps:$4 sm:$0xff]   ;;  %v3683_v12 = vld [vmem:[#allocation5 + $0x5ec] ss:$16 sps:$4 sm:$0xff]  }
  0xdf   :  { %2134 = vmatmul.mubr.bf16.vlgmr.msra.gmra.mrb[0].mxu0 %v108_v15  ;;  %2349 = vmatmul.mubr.bf16.vlgmr.msra.gmra.mrb[0].mxu1 %v108_v15  ;;  %v3686_v15 = vld [vmem:[#allocation5 + $0x604] ss:$16 sps:$4 sm:$0xff]  }
  0xe0   :  { %2145 = vmatpush1.bf16.msra.mxu0 %v3588_v13  ;;  %2360 = vmatpush1.bf16.msra.mxu1 %v3591_v14  ;;  %v3678_v13 = vld [vmem:[#allocation5 + $0x5e0] ss:$16 sps:$4 sm:$0xff]   ;;  %v3681_v14 = vld [vmem:[#allocation5 + $0x5e8] ss:$16 sps:$4 sm:$0xff]  }
  0xe1   :  { %2146 = vmatprep.subr.bf16.mxu0 %v3596_v16  ;;  %2361 = vmatprep.subr.bf16.mxu1 %v3599_v17  ;;  %v90_v16 = vld [vmem:[#allocation2 + $0x20] sm:$0xff]  ;;  %v100_v17 = vld [vmem:[#allocation2 + $0x70] sm:$0xff] }
  0xe2   :  { %2176 = vmatprep.mubr.bf16.mxu0 %v111_v22  ;;  %2391 = vmatprep.mubr.bf16.mxu1 %v111_v22  ;;  %v93_v22 = vld [vmem:[#allocation2 + $0x38] sm:$0xff] }
  0xe4   :  { %2147 = vmatpush1.bf16.msra.mxu0 %v3594_v20  ;;  %2362 = vmatpush1.bf16.msra.mxu1 %v3597_v21  ;;  %v3687_v20 = vld [vmem:[#allocation5 + $0x608] ss:$16 sps:$4 sm:$0xff]   ;;  %v110_v21 = vpack.c.bf16 %v100_v17, %v90_v16  ;;  %v3776_v17 = vld [vmem:[#allocation5 + $0x7e4] ss:$16 sps:$4 sm:$0xff]  }
  0xe5   :  { %2148 = vmatprep.subr.bf16.mxu0 %v3602_v23  ;;  %2363 = vmatprep.subr.bf16.mxu1 %v3605_v24  ;;  %v103_v23 = vld [vmem:[#allocation2 + $0x88] sm:$0xff]  ;;  %v3692_v24 = vld [vmem:[#allocation5 + $0x624] ss:$16 sps:$4 sm:$0xff]  }
  0xe6   :  { %v3771_v16 = vld [vmem:[#allocation5 + $0x7c8] ss:$16 sps:$4 sm:$0xff]  }
  0xe8   :  { %2149 = vmatpush1.bf16.msra.mxu0 %v3600_v25  ;;  %2364 = vmatpush1.bf16.msra.mxu1 %v3603_v26  ;;  %v3695_v25 = vld [vmem:[#allocation5 + $0x62c] ss:$16 sps:$4 sm:$0xff]   ;;  %v113_v26 = vpack.c.bf16 %v103_v23, %v93_v22  ;;  %v102_v22 = vld [vmem:[#allocation2 + $0x80] sm:$0xff] }
  0xe9   :  { %2150 = vmatprep.subr.bf16.mxu0 %v3608_v27  ;;  %2365 = vmatprep.subr.bf16.mxu1 %v3611_v28  ;;  %v3690_v27 = vld [vmem:[#allocation5 + $0x620] ss:$16 sps:$4 sm:$0xff]   ;;  %v3693_v28 = vld [vmem:[#allocation5 + $0x628] ss:$16 sps:$4 sm:$0xff]   ;;  %v3782_v23 = vld [vmem:[#allocation5 + $0x804] ss:$16 sps:$4 sm:$0xff]  }
  0xec   :  { %2151 = vmatpush1.bf16.msra.mxu0 %v3606_v29  ;;  %2366 = vmatpush1.bf16.msra.mxu1 %v3609_v30  ;;  %v3698_v29 = vld [vmem:[#allocation5 + $0x644] ss:$16 sps:$4 sm:$0xff]   ;;  %v3701_v30 = vld [vmem:[#allocation5 + $0x64c] ss:$16 sps:$4 sm:$0xff]  }
  0xed   :  { %2152 = vmatprep.subr.bf16.mxu0 %v3614_v31  ;;  %2367 = vmatprep.subr.bf16.mxu1 %v3617_v32  ;;  %v3696_v31 = vld [vmem:[#allocation5 + $0x640] ss:$16 sps:$4 sm:$0xff]   ;;  %v3699_v32 = vld [vmem:[#allocation5 + $0x648] ss:$16 sps:$4 sm:$0xff]  }
  0xf0   :  { %2153 = vmatpush1.bf16.msra.mxu0 %v3612_v33  ;;  %2368 = vmatpush1.bf16.msra.mxu1 %v3615_v34  ;;  %v3704_v33 = vld [vmem:[#allocation5 + $0x664] ss:$16 sps:$4 sm:$0xff]   ;;  %v3707_v34 = vld [vmem:[#allocation5 + $0x66c] ss:$16 sps:$4 sm:$0xff]  }
  0xf1   :  { %2154 = vmatprep.subr.bf16.mxu0 %v3620_v35  ;;  %2369 = vmatprep.subr.bf16.mxu1 %v3623_v36  ;;  %v3702_v35 = vld [vmem:[#allocation5 + $0x660] ss:$16 sps:$4 sm:$0xff]   ;;  %v3705_v36 = vld [vmem:[#allocation5 + $0x668] ss:$16 sps:$4 sm:$0xff]  }
  0xf4   :  { %2155 = vmatpush1.bf16.msra.mxu0 %v3618_v37  ;;  %2370 = vmatpush1.bf16.msra.mxu1 %v3621_v38  ;;  %v3710_v37 = vld [vmem:[#allocation5 + $0x684] ss:$16 sps:$4 sm:$0xff]   ;;  %v3713_v38 = vld [vmem:[#allocation5 + $0x68c] ss:$16 sps:$4 sm:$0xff]  }
  0xf5   :  { %2156 = vmatprep.subr.bf16.mxu0 %v3626_v39  ;;  %2371 = vmatprep.subr.bf16.mxu1 %v3629_v40  ;;  %v3708_v39 = vld [vmem:[#allocation5 + $0x680] ss:$16 sps:$4 sm:$0xff]   ;;  %v3711_v40 = vld [vmem:[#allocation5 + $0x688] ss:$16 sps:$4 sm:$0xff]  }
  0xf8   :  { %2157 = vmatpush1.bf16.msra.mxu0 %v3624_v41  ;;  %2372 = vmatpush1.bf16.msra.mxu1 %v3627_v42  ;;  %v3716_v41 = vld [vmem:[#allocation5 + $0x6a4] ss:$16 sps:$4 sm:$0xff]   ;;  %v3719_v42 = vld [vmem:[#allocation5 + $0x6ac] ss:$16 sps:$4 sm:$0xff]  }
  0xf9   :  { %2158 = vmatprep.subr.bf16.mxu0 %v3632_v43  ;;  %2373 = vmatprep.subr.bf16.mxu1 %v3635_v44  ;;  %v3714_v43 = vld [vmem:[#allocation5 + $0x6a0] ss:$16 sps:$4 sm:$0xff]   ;;  %v3717_v44 = vld [vmem:[#allocation5 + $0x6a8] ss:$16 sps:$4 sm:$0xff]  }
  0xfc   :  { %2159 = vmatpush1.bf16.msra.mxu0 %v3630_v45  ;;  %2374 = vmatpush1.bf16.msra.mxu1 %v3633_v46  ;;  %v3722_v45 = vld [vmem:[#allocation5 + $0x6c4] ss:$16 sps:$4 sm:$0xff]   ;;  %v3725_v46 = vld [vmem:[#allocation5 + $0x6cc] ss:$16 sps:$4 sm:$0xff]  }
  0xfd   :  { %2160 = vmatprep.subr.bf16.mxu0 %v3638_v47  ;;  %2375 = vmatprep.subr.bf16.mxu1 %v3641_v48  ;;  %v3720_v47 = vld [vmem:[#allocation5 + $0x6c0] ss:$16 sps:$4 sm:$0xff]   ;;  %v3723_v48 = vld [vmem:[#allocation5 + $0x6c8] ss:$16 sps:$4 sm:$0xff]  }
 0x100   :  { %2161 = vmatpush1.bf16.msra.mxu0 %v3636_v49  ;;  %2376 = vmatpush1.bf16.msra.mxu1 %v3639_v50  ;;  %v3728_v49 = vld [vmem:[#allocation5 + $0x6e4] ss:$16 sps:$4 sm:$0xff]   ;;  %v3731_v50 = vld [vmem:[#allocation5 + $0x6ec] ss:$16 sps:$4 sm:$0xff]  }
 0x101   :  { %2162 = vmatprep.subr.bf16.mxu0 %v3644_v51  ;;  %2377 = vmatprep.subr.bf16.mxu1 %v3647_v52  ;;  %v3726_v51 = vld [vmem:[#allocation5 + $0x6e0] ss:$16 sps:$4 sm:$0xff]   ;;  %v3729_v52 = vld [vmem:[#allocation5 + $0x6e8] ss:$16 sps:$4 sm:$0xff]  }
 0x104   :  { %2163 = vmatpush1.bf16.msra.mxu0 %v3642_v53  ;;  %2378 = vmatpush1.bf16.msra.mxu1 %v3645_v54  ;;  %v3734_v53 = vld [vmem:[#allocation5 + $0x704] ss:$16 sps:$4 sm:$0xff]   ;;  %v3737_v54 = vld [vmem:[#allocation5 + $0x70c] ss:$16 sps:$4 sm:$0xff]  }
 0x105   :  { %2164 = vmatprep.subr.bf16.mxu0 %v3650_v55  ;;  %2379 = vmatprep.subr.bf16.mxu1 %v3653_v56  ;;  %v3732_v55 = vld [vmem:[#allocation5 + $0x700] ss:$16 sps:$4 sm:$0xff]   ;;  %v3735_v56 = vld [vmem:[#allocation5 + $0x708] ss:$16 sps:$4 sm:$0xff]  }
 0x108   :  { %2165 = vmatpush1.bf16.msra.mxu0 %v3648_v57  ;;  %2380 = vmatpush1.bf16.msra.mxu1 %v3651_v58  ;;  %v3740_v57 = vld [vmem:[#allocation5 + $0x724] ss:$16 sps:$4 sm:$0xff]   ;;  %v3743_v58 = vld [vmem:[#allocation5 + $0x72c] ss:$16 sps:$4 sm:$0xff]  }
 0x109   :  { %2166 = vmatprep.subr.bf16.mxu0 %v3656_v59  ;;  %2381 = vmatprep.subr.bf16.mxu1 %v3659_v60  ;;  %v3738_v59 = vld [vmem:[#allocation5 + $0x720] ss:$16 sps:$4 sm:$0xff]   ;;  %v3741_v60 = vld [vmem:[#allocation5 + $0x728] ss:$16 sps:$4 sm:$0xff]  }
 0x10c   :  { %2167 = vmatpush1.bf16.msra.mxu0 %v3654_v61  ;;  %2382 = vmatpush1.bf16.msra.mxu1 %v3657_v62  ;;  %v3746_v61 = vld [vmem:[#allocation5 + $0x744] ss:$16 sps:$4 sm:$0xff]   ;;  %v3749_v62 = vld [vmem:[#allocation5 + $0x74c] ss:$16 sps:$4 sm:$0xff]  }
 0x10d   :  { %2168 = vmatprep.subr.bf16.mxu0 %v3662_v63  ;;  %2383 = vmatprep.subr.bf16.mxu1 %v3665_v0  ;;  %v3744_v63 = vld [vmem:[#allocation5 + $0x740] ss:$16 sps:$4 sm:$0xff]   ;;  %v3747_v0 = vld [vmem:[#allocation5 + $0x748] ss:$16 sps:$4 sm:$0xff]  }
 0x110   :  { %2169 = vmatpush1.bf16.msra.mxu0 %v3660_v1  ;;  %2384 = vmatpush1.bf16.msra.mxu1 %v3663_v2  ;;  %v3752_v1 = vld [vmem:[#allocation5 + $0x764] ss:$16 sps:$4 sm:$0xff]   ;;  %v3755_v2 = vld [vmem:[#allocation5 + $0x76c] ss:$16 sps:$4 sm:$0xff]  }
 0x111   :  { %2170 = vmatprep.subr.bf16.mxu0 %v3668_v3  ;;  %2385 = vmatprep.subr.bf16.mxu1 %v3671_v4  ;;  %v3750_v3 = vld [vmem:[#allocation5 + $0x760] ss:$16 sps:$4 sm:$0xff]   ;;  %v3753_v4 = vld [vmem:[#allocation5 + $0x768] ss:$16 sps:$4 sm:$0xff]  }
 0x114   :  { %2171 = vmatpush1.bf16.msra.mxu0 %v3666_v5  ;;  %2386 = vmatpush1.bf16.msra.mxu1 %v3669_v6  ;;  %v3758_v5 = vld [vmem:[#allocation5 + $0x784] ss:$16 sps:$4 sm:$0xff]   ;;  %v3761_v6 = vld [vmem:[#allocation5 + $0x78c] ss:$16 sps:$4 sm:$0xff]  }
 0x115   :  { %2172 = vmatprep.subr.bf16.mxu0 %v3674_v7  ;;  %2387 = vmatprep.subr.bf16.mxu1 %v3677_v8  ;;  %v3756_v7 = vld [vmem:[#allocation5 + $0x780] ss:$16 sps:$4 sm:$0xff]   ;;  %v3759_v8 = vld [vmem:[#allocation5 + $0x788] ss:$16 sps:$4 sm:$0xff]  }
 0x118   :  { %2173 = vmatpush1.bf16.msra.mxu0 %v3672_v9  ;;  %2388 = vmatpush1.bf16.msra.mxu1 %v3675_v10  ;;  %v3764_v9 = vld [vmem:[#allocation5 + $0x7a4] ss:$16 sps:$4 sm:$0xff]   ;;  %v3767_v10 = vld [vmem:[#allocation5 + $0x7ac] ss:$16 sps:$4 sm:$0xff]  }
 0x119   :  { %2174 = vmatprep.subr.bf16.mxu0 %v3680_v11  ;;  %2389 = vmatprep.subr.bf16.mxu1 %v3683_v12  ;;  %v3762_v11 = vld [vmem:[#allocation5 + $0x7a0] ss:$16 sps:$4 sm:$0xff]   ;;  %v3765_v12 = vld [vmem:[#allocation5 + $0x7a8] ss:$16 sps:$4 sm:$0xff]  }
 0x11c   :  { %2175 = vmatpush1.bf16.msra.mxu0 %v3678_v13  ;;  %2390 = vmatpush1.bf16.msra.mxu1 %v3681_v14  ;;  %v3770_v13 = vld [vmem:[#allocation5 + $0x7c4] ss:$16 sps:$4 sm:$0xff]   ;;  %v3773_v14 = vld [vmem:[#allocation5 + $0x7cc] ss:$16 sps:$4 sm:$0xff]  }
 0x11d   :  { %2187 = vmatprep.subr.bf16.mxu0 %v3686_v15  ;;  %2402 = vmatprep.subr.bf16.mxu1 %v3689_v18  ;;  %v3768_v15 = vld [vmem:[#allocation5 + $0x7c0] ss:$16 sps:$4 sm:$0xff]   ;;  %v3779_v18 = vld [vmem:[#allocation5 + $0x7ec] ss:$16 sps:$4 sm:$0xff]  }
 0x11f   :  { %2177 = vmatmul.mubr.bf16.vlgmr.msra.gmra.mrb[0].mxu0 %v110_v21  ;;  %2392 = vmatmul.mubr.bf16.vlgmr.msra.gmra.mrb[0].mxu1 %v110_v21  ;;  %v92_v21 = vld [vmem:[#allocation2 + $0x30] sm:$0xff] }
 0x120   :  { %2188 = vmatpush1.bf16.msra.mxu0 %v3684_v19  ;;  %2403 = vmatpush1.bf16.msra.mxu1 %v3687_v20  ;;  %v3774_v19 = vld [vmem:[#allocation5 + $0x7e0] ss:$16 sps:$4 sm:$0xff]   ;;  %v3777_v20 = vld [vmem:[#allocation5 + $0x7e8] ss:$16 sps:$4 sm:$0xff]  }
 0x121   :  { %2189 = vmatprep.subr.bf16.mxu0 %v3692_v24  ;;  %2404 = vmatprep.subr.bf16.mxu1 %v3695_v25  ;;  %v3785_v24 = vld [vmem:[#allocation5 + $0x80c] ss:$16 sps:$4 sm:$0xff]   ;;  %v112_v25 = vpack.c.bf16 %v102_v22, %v92_v21  ;;  %v3864_v21 = vld [vmem:[#allocation5 + $0x9c0] ss:$16 sps:$4 sm:$0xff]   ;;  %v3867_v22 = vld [vmem:[#allocation5 + $0x9c8] ss:$16 sps:$4 sm:$0xff]  }
 0x122   :  { %2219 = vmatprep.mubr.bf16.mxu0 %v113_v26  ;;  %2434 = vmatprep.mubr.bf16.mxu1 %v113_v26  ;;  %v95_v26 = vld [vmem:[#allocation2 + $0x48] sm:$0xff] }
 0x124   :  { %2190 = vmatpush1.bf16.msra.mxu0 %v3690_v27  ;;  %2405 = vmatpush1.bf16.msra.mxu1 %v3693_v28  ;;  %v105_v27 = vld [vmem:[#allocation2 + $0x98] sm:$0xff]  ;;  %v3780_v28 = vld [vmem:[#allocation5 + $0x800] ss:$16 sps:$4 sm:$0xff]  }
 0x125   :  { %2191 = vmatprep.subr.bf16.mxu0 %v3698_v29  ;;  %2406 = vmatprep.subr.bf16.mxu1 %v3701_v30  ;;  %v3783_v29 = vld [vmem:[#allocation5 + $0x808] ss:$16 sps:$4 sm:$0xff]   ;;  %v3788_v30 = vld [vmem:[#allocation5 + $0x824] ss:$16 sps:$4 sm:$0xff]  }
 0x128   :  { %2192 = vmatpush1.bf16.msra.mxu0 %v3696_v31  ;;  %2407 = vmatpush1.bf16.msra.mxu1 %v3699_v32  ;;  %v3791_v31 = vld [vmem:[#allocation5 + $0x82c] ss:$16 sps:$4 sm:$0xff]   ;;  %v115_v32 = vpack.c.bf16 %v105_v27, %v95_v26  ;;  %v3873_v26 = vld [vmem:[#allocation5 + $0x9e8] ss:$16 sps:$4 sm:$0xff]   ;;  %v94_v27 = vld [vmem:[#allocation2 + $0x40] sm:$0xff] }
 0x129   :  { %2193 = vmatprep.subr.bf16.mxu0 %v3704_v33  ;;  %2408 = vmatprep.subr.bf16.mxu1 %v3707_v34  ;;  %v3786_v33 = vld [vmem:[#allocation5 + $0x820] ss:$16 sps:$4 sm:$0xff]   ;;  %v3789_v34 = vld [vmem:[#allocation5 + $0x828] ss:$16 sps:$4 sm:$0xff]  }
 0x12c   :  { %2194 = vmatpush1.bf16.msra.mxu0 %v3702_v35  ;;  %2409 = vmatpush1.bf16.msra.mxu1 %v3705_v36  ;;  %v3794_v35 = vld [vmem:[#allocation5 + $0x844] ss:$16 sps:$4 sm:$0xff]   ;;  %v3797_v36 = vld [vmem:[#allocation5 + $0x84c] ss:$16 sps:$4 sm:$0xff]  }
 0x12d   :  { %2195 = vmatprep.subr.bf16.mxu0 %v3710_v37  ;;  %2410 = vmatprep.subr.bf16.mxu1 %v3713_v38  ;;  %v3792_v37 = vld [vmem:[#allocation5 + $0x840] ss:$16 sps:$4 sm:$0xff]   ;;  %v3795_v38 = vld [vmem:[#allocation5 + $0x848] ss:$16 sps:$4 sm:$0xff]  }
 0x130   :  { %2196 = vmatpush1.bf16.msra.mxu0 %v3708_v39  ;;  %2411 = vmatpush1.bf16.msra.mxu1 %v3711_v40  ;;  %v3800_v39 = vld [vmem:[#allocation5 + $0x864] ss:$16 sps:$4 sm:$0xff]   ;;  %v3803_v40 = vld [vmem:[#allocation5 + $0x86c] ss:$16 sps:$4 sm:$0xff]  }
 0x131   :  { %2197 = vmatprep.subr.bf16.mxu0 %v3716_v41  ;;  %2412 = vmatprep.subr.bf16.mxu1 %v3719_v42  ;;  %v3798_v41 = vld [vmem:[#allocation5 + $0x860] ss:$16 sps:$4 sm:$0xff]   ;;  %v3801_v42 = vld [vmem:[#allocation5 + $0x868] ss:$16 sps:$4 sm:$0xff]  }
 0x134   :  { %2198 = vmatpush1.bf16.msra.mxu0 %v3714_v43  ;;  %2413 = vmatpush1.bf16.msra.mxu1 %v3717_v44  ;;  %v3806_v43 = vld [vmem:[#allocation5 + $0x884] ss:$16 sps:$4 sm:$0xff]   ;;  %v3809_v44 = vld [vmem:[#allocation5 + $0x88c] ss:$16 sps:$4 sm:$0xff]  }
 0x135   :  { %2199 = vmatprep.subr.bf16.mxu0 %v3722_v45  ;;  %2414 = vmatprep.subr.bf16.mxu1 %v3725_v46  ;;  %v3804_v45 = vld [vmem:[#allocation5 + $0x880] ss:$16 sps:$4 sm:$0xff]   ;;  %v3807_v46 = vld [vmem:[#allocation5 + $0x888] ss:$16 sps:$4 sm:$0xff]  }
 0x138   :  { %2200 = vmatpush1.bf16.msra.mxu0 %v3720_v47  ;;  %2415 = vmatpush1.bf16.msra.mxu1 %v3723_v48  ;;  %v3812_v47 = vld [vmem:[#allocation5 + $0x8a4] ss:$16 sps:$4 sm:$0xff]   ;;  %v3815_v48 = vld [vmem:[#allocation5 + $0x8ac] ss:$16 sps:$4 sm:$0xff]  }
 0x139   :  { %2201 = vmatprep.subr.bf16.mxu0 %v3728_v49  ;;  %2416 = vmatprep.subr.bf16.mxu1 %v3731_v50  ;;  %v3810_v49 = vld [vmem:[#allocation5 + $0x8a0] ss:$16 sps:$4 sm:$0xff]   ;;  %v3813_v50 = vld [vmem:[#allocation5 + $0x8a8] ss:$16 sps:$4 sm:$0xff]  }
 0x13c   :  { %2202 = vmatpush1.bf16.msra.mxu0 %v3726_v51  ;;  %2417 = vmatpush1.bf16.msra.mxu1 %v3729_v52  ;;  %v3818_v51 = vld [vmem:[#allocation5 + $0x8c4] ss:$16 sps:$4 sm:$0xff]   ;;  %v3821_v52 = vld [vmem:[#allocation5 + $0x8cc] ss:$16 sps:$4 sm:$0xff]  }
 0x13d   :  { %2203 = vmatprep.subr.bf16.mxu0 %v3734_v53  ;;  %2418 = vmatprep.subr.bf16.mxu1 %v3737_v54  ;;  %v3816_v53 = vld [vmem:[#allocation5 + $0x8c0] ss:$16 sps:$4 sm:$0xff]   ;;  %v3819_v54 = vld [vmem:[#allocation5 + $0x8c8] ss:$16 sps:$4 sm:$0xff]  }
 0x140   :  { %2204 = vmatpush1.bf16.msra.mxu0 %v3732_v55  ;;  %2419 = vmatpush1.bf16.msra.mxu1 %v3735_v56  ;;  %v3824_v55 = vld [vmem:[#allocation5 + $0x8e4] ss:$16 sps:$4 sm:$0xff]   ;;  %v3827_v56 = vld [vmem:[#allocation5 + $0x8ec] ss:$16 sps:$4 sm:$0xff]  }
 0x141   :  { %2205 = vmatprep.subr.bf16.mxu0 %v3740_v57  ;;  %2420 = vmatprep.subr.bf16.mxu1 %v3743_v58  ;;  %v3822_v57 = vld [vmem:[#allocation5 + $0x8e0] ss:$16 sps:$4 sm:$0xff]   ;;  %v3825_v58 = vld [vmem:[#allocation5 + $0x8e8] ss:$16 sps:$4 sm:$0xff]  }
 0x144   :  { %2206 = vmatpush1.bf16.msra.mxu0 %v3738_v59  ;;  %2421 = vmatpush1.bf16.msra.mxu1 %v3741_v60  ;;  %v3830_v59 = vld [vmem:[#allocation5 + $0x904] ss:$16 sps:$4 sm:$0xff]   ;;  %v3833_v60 = vld [vmem:[#allocation5 + $0x90c] ss:$16 sps:$4 sm:$0xff]  }
 0x145   :  { %2207 = vmatprep.subr.bf16.mxu0 %v3746_v61  ;;  %2422 = vmatprep.subr.bf16.mxu1 %v3749_v62  ;;  %v3828_v61 = vld [vmem:[#allocation5 + $0x900] ss:$16 sps:$4 sm:$0xff]   ;;  %v3831_v62 = vld [vmem:[#allocation5 + $0x908] ss:$16 sps:$4 sm:$0xff]  }
 0x148   :  { %2208 = vmatpush1.bf16.msra.mxu0 %v3744_v63  ;;  %2423 = vmatpush1.bf16.msra.mxu1 %v3747_v0  ;;  %v3836_v63 = vld [vmem:[#allocation5 + $0x924] ss:$16 sps:$4 sm:$0xff]   ;;  %v3839_v0 = vld [vmem:[#allocation5 + $0x92c] ss:$16 sps:$4 sm:$0xff]  }
 0x149   :  { %2209 = vmatprep.subr.bf16.mxu0 %v3752_v1  ;;  %2424 = vmatprep.subr.bf16.mxu1 %v3755_v2  ;;  %v3834_v1 = vld [vmem:[#allocation5 + $0x920] ss:$16 sps:$4 sm:$0xff]   ;;  %v3837_v2 = vld [vmem:[#allocation5 + $0x928] ss:$16 sps:$4 sm:$0xff]  }
 0x14c   :  { %2210 = vmatpush1.bf16.msra.mxu0 %v3750_v3  ;;  %2425 = vmatpush1.bf16.msra.mxu1 %v3753_v4  ;;  %v3842_v3 = vld [vmem:[#allocation5 + $0x944] ss:$16 sps:$4 sm:$0xff]   ;;  %v3845_v4 = vld [vmem:[#allocation5 + $0x94c] ss:$16 sps:$4 sm:$0xff]  }
 0x14d   :  { %2211 = vmatprep.subr.bf16.mxu0 %v3758_v5  ;;  %2426 = vmatprep.subr.bf16.mxu1 %v3761_v6  ;;  %v3840_v5 = vld [vmem:[#allocation5 + $0x940] ss:$16 sps:$4 sm:$0xff]   ;;  %v3843_v6 = vld [vmem:[#allocation5 + $0x948] ss:$16 sps:$4 sm:$0xff]  }
 0x150   :  { %2212 = vmatpush1.bf16.msra.mxu0 %v3756_v7  ;;  %2427 = vmatpush1.bf16.msra.mxu1 %v3759_v8  ;;  %v3848_v7 = vld [vmem:[#allocation5 + $0x964] ss:$16 sps:$4 sm:$0xff]   ;;  %v3851_v8 = vld [vmem:[#allocation5 + $0x96c] ss:$16 sps:$4 sm:$0xff]  }
 0x151   :  { %2213 = vmatprep.subr.bf16.mxu0 %v3764_v9  ;;  %2428 = vmatprep.subr.bf16.mxu1 %v3767_v10  ;;  %v3846_v9 = vld [vmem:[#allocation5 + $0x960] ss:$16 sps:$4 sm:$0xff]   ;;  %v3849_v10 = vld [vmem:[#allocation5 + $0x968] ss:$16 sps:$4 sm:$0xff]  }
 0x154   :  { %2214 = vmatpush1.bf16.msra.mxu0 %v3762_v11  ;;  %2429 = vmatpush1.bf16.msra.mxu1 %v3765_v12  ;;  %v3854_v11 = vld [vmem:[#allocation5 + $0x984] ss:$16 sps:$4 sm:$0xff]   ;;  %v3857_v12 = vld [vmem:[#allocation5 + $0x98c] ss:$16 sps:$4 sm:$0xff]  }
 0x155   :  { %2215 = vmatprep.subr.bf16.mxu0 %v3770_v13  ;;  %2430 = vmatprep.subr.bf16.mxu1 %v3773_v14  ;;  %v3852_v13 = vld [vmem:[#allocation5 + $0x980] ss:$16 sps:$4 sm:$0xff]   ;;  %v3855_v14 = vld [vmem:[#allocation5 + $0x988] ss:$16 sps:$4 sm:$0xff]  }
 0x158   :  { %2216 = vmatpush1.bf16.msra.mxu0 %v3768_v15  ;;  %2431 = vmatpush1.bf16.msra.mxu1 %v3771_v16  ;;  %v3860_v15 = vld [vmem:[#allocation5 + $0x9a4] ss:$16 sps:$4 sm:$0xff]   ;;  %v3863_v16 = vld [vmem:[#allocation5 + $0x9ac] ss:$16 sps:$4 sm:$0xff]  }
 0x159   :  { %2217 = vmatprep.subr.bf16.mxu0 %v3776_v17  ;;  %2432 = vmatprep.subr.bf16.mxu1 %v3779_v18  ;;  %v3858_v17 = vld [vmem:[#allocation5 + $0x9a0] ss:$16 sps:$4 sm:$0xff]   ;;  %v3861_v18 = vld [vmem:[#allocation5 + $0x9a8] ss:$16 sps:$4 sm:$0xff]  }
 0x15c   :  { %2218 = vmatpush1.bf16.msra.mxu0 %v3774_v19  ;;  %2433 = vmatpush1.bf16.msra.mxu1 %v3777_v20  ;;  %v3866_v19 = vld [vmem:[#allocation5 + $0x9c4] ss:$16 sps:$4 sm:$0xff]   ;;  %v3869_v20 = vld [vmem:[#allocation5 + $0x9cc] ss:$16 sps:$4 sm:$0xff]  }
 0x15d   :  { %2230 = vmatprep.subr.bf16.mxu0 %v3782_v23  ;;  %2445 = vmatprep.subr.bf16.mxu1 %v3785_v24  ;;  %v3872_v23 = vld [vmem:[#allocation5 + $0x9e4] ss:$16 sps:$4 sm:$0xff]   ;;  %v3875_v24 = vld [vmem:[#allocation5 + $0x9ec] ss:$16 sps:$4 sm:$0xff]  }
 0x15f   :  { %2220 = vmatmul.mubr.bf16.vlgmr.msra.gmra.mrb[0].mxu0 %v112_v25  ;;  %2435 = vmatmul.mubr.bf16.vlgmr.msra.gmra.mrb[0].mxu1 %v112_v25  ;;  %v3870_v25 = vld [vmem:[#allocation5 + $0x9e0] ss:$16 sps:$4 sm:$0xff]  }
 0x160   :  { %2231 = vmatpush1.bf16.msra.mxu0 %v3780_v28  ;;  %2446 = vmatpush1.bf16.msra.mxu1 %v3783_v29  ;;  %v104_v28 = vld [vmem:[#allocation2 + $0x90] sm:$0xff] }
 0x161   :  { %2232 = vmatprep.subr.bf16.mxu0 %v3788_v30  ;;  %2447 = vmatprep.subr.bf16.mxu1 %v3791_v31  ;;  %v114_v29 = vpack.c.bf16 %v104_v28, %v94_v27  ;;  %v3876_v30 = vld [vmem:[#allocation8 + $0x40] sm:$0xff]  }
 0x162   :  { %2262 = vmatprep.mubr.bf16.mxu0 %v115_v32  ;;  %2477 = vmatprep.mubr.bf16.mxu1 %v115_v32  ;;  %v3877_v31 = vld [vmem:[#allocation8 + $0xc0] sm:$0xff]  }
 0x163   :  { %v3878_v32 = vld [vmem:[#allocation8] sm:$0xff]  }
 0x164   :  { %2233 = vmatpush1.bf16.msra.mxu0 %v3786_v33  ;;  %2448 = vmatpush1.bf16.msra.mxu1 %v3789_v34  ;;  %v3879_v33 = vld [vmem:[#allocation8 + $0x80] sm:$0xff]   ;;  %v3880_v34 = vld [vmem:[#allocation8 + $0x48] sm:$0xff]  }
 0x165   :  { %2234 = vmatprep.subr.bf16.mxu0 %v3794_v35  ;;  %2449 = vmatprep.subr.bf16.mxu1 %v3797_v36  ;;  %v3881_v35 = vld [vmem:[#allocation8 + $0xc8] sm:$0xff]  }
 0x166   :  { %v3882_v36 = vld [vmem:[#allocation8 + $0x8] sm:$0xff]  }
 0x168   :  { %2235 = vmatpush1.bf16.msra.mxu0 %v3792_v37  ;;  %2450 = vmatpush1.bf16.msra.mxu1 %v3795_v38  ;;  %v3883_v37 = vld [vmem:[#allocation8 + $0x88] sm:$0xff]   ;;  %v3884_v38 = vld [vmem:[#allocation8 + $0x50] sm:$0xff]  }
 0x169   :  { %2236 = vmatprep.subr.bf16.mxu0 %v3800_v39  ;;  %2451 = vmatprep.subr.bf16.mxu1 %v3803_v40  ;;  %v3885_v39 = vld [vmem:[#allocation8 + $0xd0] sm:$0xff]  }
 0x16a   :  { %v3886_v40 = vld [vmem:[#allocation8 + $0x10] sm:$0xff]  }
 0x16c   :  { %2237 = vmatpush1.bf16.msra.mxu0 %v3798_v41  ;;  %2452 = vmatpush1.bf16.msra.mxu1 %v3801_v42  ;;  %v3887_v41 = vld [vmem:[#allocation8 + $0x90] sm:$0xff]   ;;  %v3888_v42 = vld [vmem:[#allocation8 + $0x58] sm:$0xff]  }
 0x16d   :  { %2238 = vmatprep.subr.bf16.mxu0 %v3806_v43  ;;  %2453 = vmatprep.subr.bf16.mxu1 %v3809_v44  ;;  %v3889_v43 = vld [vmem:[#allocation8 + $0xd8] sm:$0xff]  }
 0x16e   :  { %v3890_v44 = vld [vmem:[#allocation8 + $0x18] sm:$0xff]  }
 0x170   :  { %2239 = vmatpush1.bf16.msra.mxu0 %v3804_v45  ;;  %2454 = vmatpush1.bf16.msra.mxu1 %v3807_v46  ;;  %v3891_v45 = vld [vmem:[#allocation8 + $0x98] sm:$0xff]   ;;  %v3892_v46 = vld [vmem:[#allocation8 + $0x60] sm:$0xff]  }
 0x171   :  { %2240 = vmatprep.subr.bf16.mxu0 %v3812_v47  ;;  %2455 = vmatprep.subr.bf16.mxu1 %v3815_v48  ;;  %v3893_v47 = vld [vmem:[#allocation8 + $0xe0] sm:$0xff]  }
 0x172   :  { %v3894_v48 = vld [vmem:[#allocation8 + $0x20] sm:$0xff]  }
 0x174   :  { %2241 = vmatpush1.bf16.msra.mxu0 %v3810_v49  ;;  %2456 = vmatpush1.bf16.msra.mxu1 %v3813_v50  ;;  %v3895_v49 = vld [vmem:[#allocation8 + $0xa0] sm:$0xff]   ;;  %v3896_v50 = vld [vmem:[#allocation8 + $0x68] sm:$0xff]  }
 0x175   :  { %2242 = vmatprep.subr.bf16.mxu0 %v3818_v51  ;;  %2457 = vmatprep.subr.bf16.mxu1 %v3821_v52  ;;  %v3897_v51 = vld [vmem:[#allocation8 + $0xe8] sm:$0xff]  }
 0x176   :  { %v3898_v52 = vld [vmem:[#allocation8 + $0x28] sm:$0xff]  }
 0x178   :  { %2243 = vmatpush1.bf16.msra.mxu0 %v3816_v53  ;;  %2458 = vmatpush1.bf16.msra.mxu1 %v3819_v54  ;;  %v3899_v53 = vld [vmem:[#allocation8 + $0xa8] sm:$0xff]   ;;  %v3900_v54 = vld [vmem:[#allocation8 + $0x70] sm:$0xff]  }
 0x179   :  { %2244 = vmatprep.subr.bf16.mxu0 %v3824_v55  ;;  %2459 = vmatprep.subr.bf16.mxu1 %v3827_v56  ;;  %v3901_v55 = vld [vmem:[#allocation8 + $0xf0] sm:$0xff]  }
 0x17a   :  { %v3902_v56 = vld [vmem:[#allocation8 + $0x30] sm:$0xff]  }
 0x17c   :  { %2245 = vmatpush1.bf16.msra.mxu0 %v3822_v57  ;;  %2460 = vmatpush1.bf16.msra.mxu1 %v3825_v58  ;;  %v3903_v57 = vld [vmem:[#allocation8 + $0xb0] sm:$0xff]   ;;  %v3904_v58 = vld [vmem:[#allocation8 + $0x78] sm:$0xff]  }
 0x17d   :  { %2246 = vmatprep.subr.bf16.mxu0 %v3830_v59  ;;  %2461 = vmatprep.subr.bf16.mxu1 %v3833_v60  ;;  %v3905_v59 = vld [vmem:[#allocation8 + $0xf8] sm:$0xff]  }
 0x17e   :  { %v3906_v60 = vld [vmem:[#allocation8 + $0x38] sm:$0xff]  }
 0x180   :  { %2247 = vmatpush1.bf16.msra.mxu0 %v3828_v61  ;;  %2462 = vmatpush1.bf16.msra.mxu1 %v3831_v62  ;;  %v3907_v61 = vld [vmem:[#allocation8 + $0xb8] sm:$0xff]   ;;  %v438_v62 = vlaneseq }
 0x181   :  { %2248 = vmatprep.subr.bf16.mxu0 %v3836_v63  ;;  %2463 = vmatprep.subr.bf16.mxu1 %v3839_v0 }
 0x182   :  { %v439_v63 = vshrl.u32 %v438_v62, 7 }
 0x184   :  { %2249 = vmatpush1.bf16.msra.mxu0 %v3834_v1  ;;  %2464 = vmatpush1.bf16.msra.mxu1 %v3837_v2  ;;  %v440_v0 = vsub.s32 0, %v439_v63  ;;  %v448_v1 = vsub.s32 2, %v439_v63  ;;  %v436_v2 = vld [vmem:[#allocation7] sm:$0xf] }
 0x185   :  { %2250 = vmatprep.subr.bf16.mxu0 %v3842_v3  ;;  %2465 = vmatprep.subr.bf16.mxu1 %v3845_v4  ;;  %v444_v3 = vsub.s32 1, %v439_v63  ;;  %v452_v4 = vsub.s32 3, %v439_v63 }
 0x188   :  { %2251 = vmatpush1.bf16.msra.mxu0 %v3840_v5  ;;  %2466 = vmatpush1.bf16.msra.mxu1 %v3843_v6  ;;  %v441_v5 = vrot.slane %v436_v2, %v440_v0  ;;  %v449_v6 = vrot.slane %v436_v2, %v448_v1 }
 0x189   :  { %2252 = vmatprep.subr.bf16.mxu0 %v3848_v7  ;;  %2467 = vmatprep.subr.bf16.mxu1 %v3851_v8  ;;  %v445_v7 = vrot.slane %v436_v2, %v444_v3  ;;  %v453_v8 = vrot.slane %v436_v2, %v452_v4 }
 0x18c   :  { %2253 = vmatpush1.bf16.msra.mxu0 %v3846_v9  ;;  %2468 = vmatpush1.bf16.msra.mxu1 %v3849_v10 }
 0x18d   :  { %2254 = vmatprep.subr.bf16.mxu0 %v3854_v11  ;;  %2469 = vmatprep.subr.bf16.mxu1 %v3857_v12 }
 0x190   :  { %2255 = vmatpush1.bf16.msra.mxu0 %v3852_v13  ;;  %2470 = vmatpush1.bf16.msra.mxu1 %v3855_v14 }
 0x191   :  { %2256 = vmatprep.subr.bf16.mxu0 %v3860_v15  ;;  %2471 = vmatprep.subr.bf16.mxu1 %v3863_v16 }
 0x194   :  { %2257 = vmatpush1.bf16.msra.mxu0 %v3858_v17  ;;  %2472 = vmatpush1.bf16.msra.mxu1 %v3861_v18 }
 0x195   :  { %2258 = vmatprep.subr.bf16.mxu0 %v3866_v19  ;;  %2473 = vmatprep.subr.bf16.mxu1 %v3869_v20 }
 0x198   :  { %2259 = vmatpush1.bf16.msra.mxu0 %v3864_v21  ;;  %2474 = vmatpush1.bf16.msra.mxu1 %v3867_v22 }
 0x199   :  { %2260 = vmatprep.subr.bf16.mxu0 %v3872_v23  ;;  %2475 = vmatprep.subr.bf16.mxu1 %v3875_v24 }
 0x19c   :  { %2261 = vmatpush1.bf16.msra.mxu0 %v3870_v25  ;;  %2476 = vmatpush1.bf16.msra.mxu1 %v3873_v26 }
 0x19d   :  { %3300 = vmatprep.subr.bf16.mxu0 %v3876_v30  ;;  %3322 = vmatprep.subr.bf16.mxu1 %v3877_v31 }
 0x19f   :  { %2263 = vmatmul.mubr.bf16.vlgmr.msra.gmra.mrb[0].mxu0 %v114_v29  ;;  %2478 = vmatmul.mubr.bf16.vlgmr.msra.gmra.mrb[0].mxu1 %v114_v29 }
 0x1a0   :  { %3301 = vmatpush3.bf16.msra.mxu0 %v3878_v32  ;;  %3323 = vmatpush3.bf16.msra.mxu1 %v3879_v33 }
 0x1a1   :  { %3302 = vmatprep.subr.bf16.mxu0 %v3880_v34  ;;  %3324 = vmatprep.subr.bf16.mxu1 %v3881_v35 }
 0x1a4   :  { %3303 = vmatpush3.bf16.msra.mxu0 %v3882_v36  ;;  %3325 = vmatpush3.bf16.msra.mxu1 %v3883_v37 }
 0x1a5   :  { %3304 = vmatprep.subr.bf16.mxu0 %v3884_v38  ;;  %3326 = vmatprep.subr.bf16.mxu1 %v3885_v39 }
 0x1a8   :  { %3305 = vmatpush3.bf16.msra.mxu0 %v3886_v40  ;;  %3327 = vmatpush3.bf16.msra.mxu1 %v3887_v41 }
 0x1a9   :  { %3306 = vmatprep.subr.bf16.mxu0 %v3888_v42  ;;  %3328 = vmatprep.subr.bf16.mxu1 %v3889_v43 }
 0x1ac   :  { %3307 = vmatpush3.bf16.msra.mxu0 %v3890_v44  ;;  %3329 = vmatpush3.bf16.msra.mxu1 %v3891_v45 }
 0x1ad   :  { %3308 = vmatprep.subr.bf16.mxu0 %v3892_v46  ;;  %3330 = vmatprep.subr.bf16.mxu1 %v3893_v47 }
 0x1b0   :  { %3309 = vmatpush3.bf16.msra.mxu0 %v3894_v48  ;;  %3331 = vmatpush3.bf16.msra.mxu1 %v3895_v49 }
 0x1b1   :  { %3310 = vmatprep.subr.bf16.mxu0 %v3896_v50  ;;  %3332 = vmatprep.subr.bf16.mxu1 %v3897_v51 }
 0x1b4   :  { %3311 = vmatpush3.bf16.msra.mxu0 %v3898_v52  ;;  %3333 = vmatpush3.bf16.msra.mxu1 %v3899_v53 }
 0x1b5   :  { %3312 = vmatprep.subr.bf16.mxu0 %v3900_v54  ;;  %3334 = vmatprep.subr.bf16.mxu1 %v3901_v55 }
 0x1b8   :  { %3313 = vmatpush3.bf16.msra.mxu0 %v3902_v56  ;;  %3335 = vmatpush3.bf16.msra.mxu1 %v3903_v57 }
 0x1b9   :  { %3314 = vmatprep.subr.bf16.mxu0 %v3904_v58  ;;  %3336 = vmatprep.subr.bf16.mxu1 %v3905_v59 }
 0x1bc   :  { %3315 = vmatpush3.bf16.msra.mxu0 %v3906_v60  ;;  %3337 = vmatpush3.bf16.msra.mxu1 %v3907_v61 }
 0x272   :  { %v2264_v9 = vpop.f32.mrb[0].mxu0  ;;  %v2479_v10 = vpop.f32.mrb[0].mxu1 }
 0x273   :  { %v4169_v11 = vadd.f32 %v2264_v9, %v441_v5  ;;  %v4171_v12 = vadd.f32 %v2479_v10, %v449_v6  ;;  %v2266_v13 = vpop.f32.mrb[1].mxu0  ;;  %v2481_v14 = vpop.f32.mrb[1].mxu1 }
 0x274   :  { %v4173_v15 = vadd.f32 %v2266_v13, %v445_v7  ;;  %v4175_v16 = vadd.f32 %v2481_v14, %v453_v8  ;;  %v2268_v17 = vpop.f32.mrb[2].mxu0  ;;  %v2483_v18 = vpop.f32.mrb[2].mxu1 }
 0x275   :  { %v2488_v19 = vmul.f32 %v4169_v11, %v4169_v11  ;;  %v2490_v20 = vmul.f32 %v4171_v12, %v4171_v12  ;;  %v4181_v21 = vadd.f32 %v2268_v17, %v441_v5  ;;  %v4183_v22 = vadd.f32 %v2483_v18, %v449_v6  ;;  %v2270_v23 = vpop.f32.mrb[3].mxu0  ;;  %v2485_v24 = vpop.f32.mrb[3].mxu1 }
 0x276   :  { %v2489_v25 = vmul.f32 %v4173_v15, %v4173_v15  ;;  %v2491_v26 = vmul.f32 %v4175_v16, %v4175_v16  ;;  %v4189_v27 = vadd.f32 %v2270_v23, %v445_v7  ;;  %v4191_v28 = vadd.f32 %v2485_v24, %v453_v8 }
 0x277   :  { %v2496_v29 = vmul.f32 %v4169_v11, %v2488_v19  ;;  %v2498_v30 = vmul.f32 %v4171_v12, %v2490_v20  ;;  %v2492_v31 = vmul.f32 %v4181_v21, %v4181_v21  ;;  %v2494_v32 = vmul.f32 %v4183_v22, %v4183_v22 }
 0x278   :  { %v2497_v33 = vmul.f32 %v4173_v15, %v2489_v25  ;;  %v2499_v34 = vmul.f32 %v4175_v16, %v2491_v26  ;;  %v2493_v35 = vmul.f32 %v4189_v27, %v4189_v27  ;;  %v2495_v36 = vmul.f32 %v4191_v28, %v4191_v28 }
 0x279   :  { %v2504_v37 = vmul.f32 0.044715, %v2496_v29  ;;  %v2506_v38 = vmul.f32 0.044715, %v2498_v30  ;;  %v2500_v39 = vmul.f32 %v4181_v21, %v2492_v31  ;;  %v2502_v40 = vmul.f32 %v4183_v22, %v2494_v32 }
 0x27a   :  { %v2505_v41 = vmul.f32 0.044715, %v2497_v33  ;;  %v2507_v42 = vmul.f32 0.044715, %v2499_v34  ;;  %v2501_v43 = vmul.f32 %v4189_v27, %v2493_v35  ;;  %v2503_v44 = vmul.f32 %v4191_v28, %v2495_v36 }
 0x27b   :  { %v2512_v45 = vadd.f32 %v4169_v11, %v2504_v37  ;;  %v2514_v46 = vadd.f32 %v4171_v12, %v2506_v38  ;;  %v2508_v47 = vmul.f32 0.044715, %v2500_v39  ;;  %v2510_v48 = vmul.f32 0.044715, %v2502_v40 }
 0x27c   :  { %v2513_v49 = vadd.f32 %v4173_v15, %v2505_v41  ;;  %v2515_v50 = vadd.f32 %v4175_v16, %v2507_v42  ;;  %v2509_v51 = vmul.f32 0.044715, %v2501_v43  ;;  %v2511_v52 = vmul.f32 0.044715, %v2503_v44 }
 0x27d   :  { %v2520_v53 = vmul.f32 0.7978846, %v2512_v45  ;;  %v2522_v54 = vmul.f32 0.7978846, %v2514_v46  ;;  %v2516_v55 = vadd.f32 %v4181_v21, %v2508_v47  ;;  %v2518_v56 = vadd.f32 %v4183_v22, %v2510_v48 }
 0x27e   :  { %v2521_v57 = vmul.f32 0.7978846, %v2513_v49  ;;  %v2523_v58 = vmul.f32 0.7978846, %v2515_v50  ;;  %v2517_v59 = vadd.f32 %v4189_v27, %v2509_v51  ;;  %v2519_v60 = vadd.f32 %v4191_v28, %v2511_v52 }
 0x27f   :  { %3908 = vtanh.f32 %v2520_v53  ;;  %v2524_v61 = vmul.f32 0.7978846, %v2516_v55  ;;  %v2526_v62 = vmul.f32 0.7978846, %v2518_v56 }
 0x280   :  { %3910 = vtanh.f32 %v2522_v54  ;;  %v2525_v63 = vmul.f32 0.7978846, %v2517_v59  ;;  %v2527_v0 = vmul.f32 0.7978846, %v2519_v60 }
 0x281   :  { %3912 = vtanh.f32 %v2521_v57 }
 0x282   :  { %3914 = vtanh.f32 %v2523_v58 }
 0x283   :  { %3916 = vtanh.f32 %v2524_v61 }
 0x284   :  { %3918 = vtanh.f32 %v2526_v62 }
 0x285   :  { %3920 = vtanh.f32 %v2525_v63 }
 0x286   :  { %3922 = vtanh.f32 %v2527_v0 }
 0x289   :  { %v3909_v1 = vpop.eup %3908 }
 0x28a   :  { %v3911_v2 = vpop.eup %3910  ;;  %v2536_v3 = vadd.f32 1.0, %v3909_v1 }
 0x28b   :  { %v3913_v4 = vpop.eup %3912  ;;  %v2538_v5 = vadd.f32 1.0, %v3911_v2 }
 0x28c   :  { %v3915_v6 = vpop.eup %3914  ;;  %v2537_v7 = vadd.f32 1.0, %v3913_v4  ;;  %v2544_v13 = vmul.f32 0.5, %v2536_v3 }
 0x28d   :  { %v3917_v8 = vpop.eup %3916  ;;  %v2539_v9 = vadd.f32 1.0, %v3915_v6  ;;  %v2546_v18 = vmul.f32 0.5, %v2538_v5 }
 0x28e   :  { %v3919_v10 = vpop.eup %3918  ;;  %v2540_v14 = vadd.f32 1.0, %v3917_v8  ;;  %v2545_v25 = vmul.f32 0.5, %v2537_v7  ;;  %v2552_v31 = vmul.f32 %v4169_v11, %v2544_v13 }
 0x28f   :  { %v3921_v17 = vpop.eup %3920  ;;  %v2542_v19 = vadd.f32 1.0, %v3919_v10  ;;  %v2547_v30 = vmul.f32 0.5, %v2539_v9  ;;  %v2554_v34 = vmul.f32 %v4171_v12, %v2546_v18 }
 0x290   :  { %v3923_v20 = vpop.eup %3922  ;;  %v2548_v23 = vmul.f32 0.5, %v2540_v14  ;;  %v2541_v24 = vadd.f32 1.0, %v3921_v17  ;;  %v2553_v37 = vmul.f32 %v4173_v15, %v2545_v25 }
 0x291   :  { %v2550_v26 = vmul.f32 0.5, %v2542_v19  ;;  %v2543_v29 = vadd.f32 1.0, %v3923_v20  ;;  %v2555_v40 = vmul.f32 %v4175_v16, %v2547_v30 }
 0x292   :  { %v2556_v32 = vmul.f32 %v4181_v21, %v2548_v23  ;;  %v2549_v33 = vmul.f32 0.5, %v2541_v24 }
 0x293   :  { %v2558_v35 = vmul.f32 %v4183_v22, %v2550_v26  ;;  %v2551_v36 = vmul.f32 0.5, %v2543_v29  ;;  %v3258_v22 = vld [vmem:[#allocation10] ss:$0 sm:$0xff] }
 0x294   :  { %v2557_v38 = vmul.f32 %v4189_v27, %v2549_v33  ;;  %v2560_v39 = vpack.c.bf16 %v2556_v32, %v2552_v31 }
 0x295   :  { %v2559_v41 = vmul.f32 %v4191_v28, %v2551_v36  ;;  %v2562_v42 = vpack.c.bf16 %v2558_v35, %v2554_v34 }
 0x296   :  { %v2561_v43 = vpack.c.bf16 %v2557_v38, %v2553_v37 }
 0x297   :  { %v2563_v11 = vpack.c.bf16 %v2559_v41, %v2555_v40 }
 0x298   :  { %2859 = vmatprep.mubr.bf16.mxu0 %v2561_v43 }
 0x299   :  { %2900 = vmatprep.mubr.bf16.mxu1 %v2563_v11  ;;  %2860 = vmatmul.mubr.bf16.vlgmr.msra.gmra.mrb[4].mxu0 %v2560_v39 }
 0x29a   :  { %2901 = vmatmul.mubr.bf16.vlgmr.msra.gmra.mrb[4].mxu1 %v2562_v42 }
 0x36c   :  { %v3316_v12 = vpop.f32.mrb[4].mxu0 }
 0x36d   :  { %v3338_v21 = vpop.f32.mrb[4].mxu1  ;;  %v3317_v44 = vpop.f32.mrb[5].mxu0 }
 0x36e   :  { %v3318_v45 = vadd.f32 %v3317_v44, %v3316_v12  ;;  %v3339_v15 = vpop.f32.mrb[5].mxu1  ;;  %v3319_v46 = vpop.f32.mrb[6].mxu0 }
 0x36f   :  { %v3340_v27 = vadd.f32 %v3339_v15, %v3338_v21  ;;  %v3341_v47 = vpop.f32.mrb[6].mxu1  ;;  %v3320_v48 = vpop.f32.mrb[7].mxu0 }
 0x370   :  { %v2862_v16 = vadd.f32 %v3318_v45, %v3258_v22  ;;  %v3321_v49 = vadd.f32 %v3320_v48, %v3319_v46  ;;  %v3342_v28 = vpop.f32.mrb[7].mxu1 }
 0x371   :  { %v3343_v50 = vadd.f32 %v3342_v28, %v3341_v47 }
 0x372   :  { %v2903_v51 = vadd.f32 %v3340_v27, %v2862_v16  ;;  %v2865_v52 = vadd.f32 %v3321_v49, %v3258_v22 }
 0x374   :  { %v2906_v53 = vadd.f32 %v3343_v50, %v2865_v52 }
 0x376   :  { %v3298_v54 = vpack.c.bf16 %v2906_v53, %v2903_v51 }
 0x378   :  { %3299 = vst [vmem:[#allocation11] sm:$0xff] %v3298_v54  }
 0x379   :  { %2923 = vsyncadd [#allocation4], 64  ;;  %s4075_s4 = smov [#allocation11]  }
 0x37a   :  { %s2924_s7 = sshll.u32 %s4075_s4, 4  ;;  %s2925_s7 = int_to_ptr.vmem [resolvable:$true] %s2924_s7 }
 0x37b   :  { %s4034_s8 = scalar_lea.vmem %s2925_s7, 64  ;;  %s4038_s9 = scalar_lea.vmem %s2925_s7, 128 }
 0x37c   :  { %p4035_p12 = scmp.ne.s32.totalorder %s2925_s7, %s4034_s8  ;;  %p4039_p13 = scmp.lt.s32.totalorder %s2925_s7, %s2925_s7 }
 0x37d   :  { %p4040_p0 = scmp.lt.s32.totalorder %s4038_s9, %s4034_s8 }
 0x37f   :  { %p4041_p1 = por %p4040_p0, %p4039_p13 }
 0x381   :  { %p4042_p2 = pnand %p4041_p1, %p4035_p12 }
 0x383   :  { %4045 = shalt.err (!%p4042_p2)
}
 0x384   :  { %s4046_s12 = scalar_lea.hbm %s4245_s5, 64 }
 0x385   :  { %p4047_p3 = scmp.ne.s32.totalorder %s4245_s5, %s4046_s12  ;;  %p4050_p4 = scmp.lt.u32.totalorder %s4046_s12, %s4245_s5 }
 0x387   :  { %p4052_p5 = pnand %p4050_p4, %p4047_p3 }
 0x389   :  { %4055 = shalt.err (!%p4052_p5)
}
 0x38a   :  { %2930 = dma.vmem_to_hbm [thread:$0]  %s2925_s7, 64, %s4245_s5, [#allocation4], %s4068_s1, %s4068_s1, %s4069_s17  }
 0x38b   :  { %4062 = dma.done.wait [#allocation4], 128  }
 0x38c   :  { %4063 = vsyncadd [#allocation4], 4294967168 }
 0x38d   :  { %2934 = vsyncpa [#allocation3], 1 }
 0x38e   :  { %2935 = vsyncpa [#allocation6], 1 }
 0x38f   :  { %2936 = vsyncpa [#allocation9], 1 }
 0x390   :  { %2937 = vsyncpa [#allocation4], 1 }

</bundles_post_ra>
